<compile_context>
chip_gen: v7x
topology: tpu7x:2x2x1
jax: 0.10.0
libtpu: 0.0.40
codegen_flags: <defaults>
</compile_context>

<pallas_src>
import functools

import numpy as np

import jax
import jax.numpy as jnp
from jax.experimental import pallas as pl
from jax.experimental.pallas import tpu as pltpu


# ---------------------------------------------------------------------------
# VMEM budgeting (v5e/v6e: 128 MiB, v7x: 64 MiB)
# ---------------------------------------------------------------------------
def _vmem_capacity_bytes():
    try:
        return int(pltpu.get_tpu_info().vmem_capacity_bytes)
    except Exception:
        return 64 * 1024 * 1024        # conservative default (v7x)


_VMEM_CAP = _vmem_capacity_bytes()
_VMEM_TILE_BUDGET = int(_VMEM_CAP * 0.35)   # double-buffered tiles + weights
_VMEM_LIMIT = int(min(_VMEM_CAP * 0.6, 100 * 1024 * 1024))


def _round_up(a, b):
    return (a + b - 1) // b * b


def _cdiv(a, b):
    return -(-a // b)


def _pick_tm(m, row_bytes, resident_bytes):
    """Largest M-tile whose double-buffered tiles + resident weights fit the
    per-chip VMEM budget; keeps >=2 grid steps when m allows (v7x megacore)."""
    tm_max = 2048
    while tm_max > 128 and (2 * tm_max * row_bytes + resident_bytes
                            > _VMEM_TILE_BUDGET):
        tm_max //= 2
    n_tiles = _cdiv(m, tm_max)
    if m >= 256:
        n_tiles = max(n_tiles, 2)      # both v7x TensorCores get work
    return _round_up(_cdiv(m, n_tiles), 8)


# ---------------------------------------------------------------------------
# Kernels
# ---------------------------------------------------------------------------
def _conv1x1_bias_act_kernel(x_ref, w_ref, b_ref, o_ref, *, relu):
    # x: (TM, Cin) bf16, w: (Cin, Cout) bf16 (BN scale pre-folded), b: (1, Cout)
    acc = jnp.dot(x_ref[...], w_ref[...], preferred_element_type=jnp.float32)
    acc = acc + b_ref[...]
    if relu:
        acc = jnp.maximum(acc, 0.0)
    o_ref[...] = acc.astype(o_ref.dtype)


def _conv3_identity_residual_kernel(y_ref, r_ref, w3_ref, b3_ref, o_ref):
    # out = relu(y @ w3 + b3 + identity)
    acc = jnp.dot(y_ref[...], w3_ref[...], preferred_element_type=jnp.float32)
    acc = acc + b3_ref[...] + r_ref[...].astype(jnp.float32)
    o_ref[...] = jnp.maximum(acc, 0.0).astype(o_ref.dtype)


def _conv3_downsample_residual_kernel(y_ref, x_ref, w3_ref, b3_ref,
                                      wd_ref, bd_ref, o_ref):
    # out = relu(y @ w3 + b3 + x @ wd + bd)  -- downsample conv fused in
    acc = jnp.dot(y_ref[...], w3_ref[...], preferred_element_type=jnp.float32)
    acc = acc + jnp.dot(x_ref[...], wd_ref[...],
                        preferred_element_type=jnp.float32)
    acc = acc + b3_ref[...] + bd_ref[...]
    o_ref[...] = jnp.maximum(acc, 0.0).astype(o_ref.dtype)


def _conv3x3_bias_relu_kernel(x_ref, w_ref, b_ref, o_ref, *, ho, wo, stride):
    # x_ref: (Hp, Wp, Cin) padded image, w_ref: (9, Cin, Cout),
    # b_ref: (1, Cout) f32, o_ref: (Ho, Wo, Cout)
    cout = w_ref.shape[-1]
    bias = b_ref[...]

    @pl.loop(0, ho)
    def _(r):
        acc = jnp.zeros((wo, cout), jnp.float32)
        for dy in range(3):
            row = x_ref[r * stride + dy]              # (Wp, Cin), contiguous
            for dx in range(3):
                if stride == 1:
                    patch = row[dx:dx + wo, :]        # contiguous tap slab
                else:
                    # stride > 1: small per-row strided slice fallback
                    patch = row[dx:dx + stride * (wo - 1) + 1:stride, :]
                acc = acc + jnp.dot(patch, w_ref[dy * 3 + dx],
                                    preferred_element_type=jnp.float32)
        y = jnp.maximum(acc + bias, 0.0)
        o_ref[pl.ds(r, 1)] = y[None].astype(o_ref.dtype)


# ---------------------------------------------------------------------------
# pallas_call wrappers
# ---------------------------------------------------------------------------
def _tiled_rows_call(kernel, row_arrays, const_arrays, out_cols, out_dtype):
    """Row-tiled fused matmul: row_arrays are (M, Ci), tiled along M;
    const_arrays are small resident operands (weights / biases)."""
    m = row_arrays[0].shape[0]
    row_bytes = sum(a.shape[1] * a.dtype.itemsize for a in row_arrays)
    row_bytes += out_cols * np.dtype(out_dtype).itemsize
    resident_bytes = sum(int(a.size) * a.dtype.itemsize for a in const_arrays)
    tm = _pick_tm(m, row_bytes, resident_bytes)
    m_pad = _round_up(m, tm)
    if m_pad != m:
        row_arrays = [jnp.pad(a, ((0, m_pad - m), (0, 0))) for a in row_arrays]

    in_specs = [pl.BlockSpec((tm, a.shape[1]), lambda i: (i, 0))
                for a in row_arrays]
    in_specs += [pl.BlockSpec(a.shape, lambda i: (0, 0))
                 for a in const_arrays]

    out = pl.pallas_call(
        kernel,
        out_shape=jax.ShapeDtypeStruct((m_pad, out_cols), out_dtype),
        grid_spec=pltpu.PrefetchScalarGridSpec(
            num_scalar_prefetch=0,
            grid=(m_pad // tm,),
            in_specs=in_specs,
            out_specs=pl.BlockSpec((tm, out_cols), lambda i: (i, 0)),
        ),
        compiler_params=pltpu.CompilerParams(
            dimension_semantics=("parallel",),
            vmem_limit_bytes=_VMEM_LIMIT),
    )(*row_arrays, *const_arrays)
    return out[:m] if m_pad != m else out


def conv3x3_bias_relu(x_nhwc, w9, bias, *, stride):
    n, h, w, cin = x_nhwc.shape
    cout = w9.shape[-1]
    ho = (h + 2 - 3) // stride + 1
    wo = (w + 2 - 3) // stride + 1
    hp, wp = h + 2, w + 2
    xp = jnp.pad(x_nhwc, ((0, 0), (1, 1), (1, 1), (0, 0)))
    kern = functools.partial(_conv3x3_bias_relu_kernel,
                             ho=ho, wo=wo, stride=stride)
    return pl.pallas_call(
        kern,
        out_shape=jax.ShapeDtypeStruct((n, ho, wo, cout), jnp.bfloat16),
        grid_spec=pltpu.PrefetchScalarGridSpec(
            num_scalar_prefetch=0,
            grid=(n,),
            in_specs=[
                pl.BlockSpec((None, hp, wp, cin), lambda i: (i, 0, 0, 0)),
                pl.BlockSpec((9, cin, cout), lambda i: (0, 0, 0)),
                pl.BlockSpec((1, cout), lambda i: (0, 0)),
            ],
            out_specs=pl.BlockSpec((None, ho, wo, cout),
                                   lambda i: (i, 0, 0, 0)),
        ),
        compiler_params=pltpu.CompilerParams(
            dimension_semantics=("parallel",),
            vmem_limit_bytes=_VMEM_LIMIT),
    )(xp, w9, bias)


# ---------------------------------------------------------------------------
# Bottleneck forward (glue in plain JAX)
# ---------------------------------------------------------------------------
def _fold_bn_into_weight(w, bn_params, eps=1e-5):
    gamma, beta, mean, var = bn_params
    scale = gamma / jnp.sqrt(var + eps)                   # (Cout,)
    bias = (beta - mean * scale).astype(jnp.float32).reshape(1, -1)
    w_folded = (w * scale).astype(jnp.bfloat16)           # fold over last axis
    return w_folded, bias


def bottleneck_pallas(x_nchw, params, *, stride=1, downsample=False):
    x = jnp.transpose(x_nchw, (0, 2, 3, 1)).astype(jnp.bfloat16)  # NHWC bf16
    n, h, w, cin = x.shape
    cmid = params["w1"].shape[1]
    cexp = params["w3"].shape[1]

    w1f, b1 = _fold_bn_into_weight(params["w1"], params["bn1"])
    w2f, b2 = _fold_bn_into_weight(params["w2"], params["bn2"])
    w3f, b3 = _fold_bn_into_weight(params["w3"], params["bn3"])
    w2f = w2f.reshape(9, cmid, cmid)

    # conv1 (1x1) + bn1 + relu
    y = _tiled_rows_call(
        functools.partial(_conv1x1_bias_act_kernel, relu=True),
        [x.reshape(n * h * w, cin)], [w1f, b1], cmid, jnp.bfloat16)
    y = y.reshape(n, h, w, cmid)

    # conv2 (3x3, stride, pad=1) + bn2 + relu
    y = conv3x3_bias_relu(y, w2f, b2, stride=stride)
    ho, wo = y.shape[1], y.shape[2]
    m = n * ho * wo

    # conv3 (1x1) + bn3 + residual + final relu, fused in one kernel
    xs = x if stride == 1 else x[:, ::stride, ::stride, :]
    xs2d = xs.reshape(m, cin)
    y2d = y.reshape(m, cmid)
    if downsample:
        wdf, bd = _fold_bn_into_weight(params["wd"], params["bnd"])
        out2d = _tiled_rows_call(
            _conv3_downsample_residual_kernel,
            [y2d, xs2d], [w3f, b3, wdf, bd], cexp, jnp.float32)
    else:
        if cin != cexp:
            raise ValueError(
                "identity residual requires in_channels == expansion*out_"
                "channels (got %d vs %d)" % (cin, cexp))
        out2d = _tiled_rows_call(
            _conv3_identity_residual_kernel,
            [y2d, xs2d], [w3f, b3], cexp, jnp.float32)

    out = out2d.reshape(n, ho, wo, cexp)
    return jnp.transpose(out, (0, 3, 1, 2)).astype(jnp.float32)   # -> NCHW


# ---------------------------------------------------------------------------
# Reference (pure JAX/XLA), mirroring the kernel's bf16/f32 precision flow
# ---------------------------------------------------------------------------
def bottleneck_reference(x_nchw, params, *, stride=1, downsample=False):
    dn = ("NHWC", "HWIO", "NHWC")
    x = jnp.transpose(x_nchw, (0, 2, 3, 1)).astype(jnp.bfloat16)

    def bn(y, bnp, eps=1e-5):
        gamma, beta, mean, var = bnp
        s = gamma / jnp.sqrt(var + eps)
        return y * s + (beta - mean * s)

    def conv(y, w4, s=1, pad="VALID"):
        return jax.lax.conv_general_dilated(
            y.astype(jnp.bfloat16), w4.astype(jnp.bfloat16), (s, s), pad,
            dimension_numbers=dn, preferred_element_type=jnp.float32)

    def as4d(w2d):
        return w2d.reshape(1, 1, *w2d.shape)

    y = jax.nn.relu(bn(conv(x, as4d(params["w1"])), params["bn1"]))
    y = conv(y, params["w2"], stride, ((1, 1), (1, 1)))
    y = jax.nn.relu(bn(y, params["bn2"]))
    y = bn(conv(y, as4d(params["w3"])), params["bn3"])
    if downsample:
        i = bn(conv(x, as4d(params["wd"]), stride), params["bnd"])
    else:
        i = x[:, ::stride, ::stride, :].astype(jnp.float32)
    out = jax.nn.relu(y + i)
    return jnp.transpose(out, (0, 3, 1, 2)).astype(jnp.float32)


# ---------------------------------------------------------------------------
# Deterministic parameter init
# ---------------------------------------------------------------------------
def init_params(key, cin, cout, *, downsample):
    exp = 4
    ks = jax.random.split(key, 8)

    def bn_init(k, c):
        k1, k2, k3, k4 = jax.random.split(k, 4)
        gamma = 1.0 + 0.1 * jax.random.normal(k1, (c,), jnp.float32)
        beta = 0.1 * jax.random.normal(k2, (c,), jnp.float32)
        mean = 0.1 * jax.random.normal(k3, (c,), jnp.float32)
        var = 1.0 + 0.2 * jnp.abs(jax.random.normal(k4, (c,), jnp.float32))
        return (gamma, beta, mean, var)

    p = {
        "w1": 0.2 * jax.random.normal(ks[0], (cin, cout), jnp.float32),
        "bn1": bn_init(ks[1], cout),
        "w2": 0.2 * jax.random.normal(ks[2], (3, 3, cout, cout), jnp.float32),
        "bn2": bn_init(ks[3], cout),
        "w3": 0.2 * jax.random.normal(ks[4], (cout, exp * cout), jnp.float32),
        "bn3": bn_init(ks[5], exp * cout),
    }
    if downsample:
        p["wd"] = 0.2 * jax.random.normal(ks[6], (cin, exp * cout), jnp.float32)
        p["bnd"] = bn_init(ks[7], exp * cout)
    return p


# ---------------------------------------------------------------------------
if __name__ == "__main__":
    key = jax.random.PRNGKey(0)
    kx1, kp1, kx2, kp2 = jax.random.split(key, 4)

    # Case 1: downsample variant (residual channels change), stride=1.
    in_ch, out_ch, stride = 4, 8, 1
    x1 = jax.random.normal(kx1, (2, in_ch, 16, 16), jnp.float32)       # NCHW
    params1 = init_params(kp1, in_ch, out_ch, downsample=True)
    fwd1 = jax.jit(functools.partial(bottleneck_pallas, stride=stride,
                                     downsample=True))
    out1 = jax.block_until_ready(fwd1(x1, params1))
    ref1 = bottleneck_reference(x1, params1, stride=stride, downsample=True)
    assert out1.shape == (2, 4 * out_ch, 16, 16), out1.shape
    assert jnp.allclose(out1, ref1, atol=1e-1, rtol=5e-2), float(
        jnp.max(jnp.abs(out1 - ref1)))

    # Case 2: identity residual (in_channels == expansion * out_channels).
    x2 = jax.random.normal(kx2, (2, 32, 16, 16), jnp.float32)
    params2 = init_params(kp2, 32, 8, downsample=False)
    fwd2 = jax.jit(functools.partial(bottleneck_pallas, stride=1,
                                     downsample=False))
    out2 = jax.block_until_ready(fwd2(x2, params2))
    ref2 = bottleneck_reference(x2, params2, stride=1, downsample=False)
    assert out2.shape == (2, 32, 16, 16), out2.shape
    assert jnp.allclose(out2, ref2, atol=1e-1, rtol=5e-2), float(
        jnp.max(jnp.abs(out2 - ref2)))

    print("KERNEL_OK")
</pallas_src>

<mosaic_0001>
module attributes {stable_mosaic.version = 11 : i64} {
  func.func @_conv1x1_bias_act_kernel(%arg0: i32, %arg1: memref<256x4xbf16, #tpu.memory_space<vmem>>, %arg2: memref<4x8xbf16, #tpu.memory_space<vmem>>, %arg3: memref<1x8xf32, #tpu.memory_space<vmem>>, %arg4: memref<256x8xbf16, #tpu.memory_space<vmem>>) attributes {dimension_semantics = [#tpu.dimension_semantics<parallel>], iteration_bounds = array<i64: 2>, scalar_prefetch = 0 : i64, scratch_operands = 0 : i64, tpu.core_type = #tpu.core_type<tc>, window_params = [{transform_indices = @transform_0, window_bounds = array<i64: 256, 4>}, {pipeline_mode = #tpu.pipeline_mode<synchronous>, transform_indices = @transform_1, window_bounds = array<i64: 4, 8>}, {pipeline_mode = #tpu.pipeline_mode<synchronous>, transform_indices = @transform_2, window_bounds = array<i64: 1, 8>}, {transform_indices = @transform_3, window_bounds = array<i64: 256, 8>}]} {
    %c0 = arith.constant 0 : index
    %c0_0 = arith.constant 0 : index
    %0 = vector.load %arg1[%c0, %c0_0] : memref<256x4xbf16, #tpu.memory_space<vmem>>, vector<256x4xbf16>
    %c0_1 = arith.constant 0 : index
    %c0_2 = arith.constant 0 : index
    %1 = vector.load %arg2[%c0_1, %c0_2] : memref<4x8xbf16, #tpu.memory_space<vmem>>, vector<4x8xbf16>
    %cst = arith.constant dense<0.000000e+00> : vector<256x8xf32>
    %2 = tpu.matmul %0, %1, %cst {dimension_numbers = #tpu.dot_dimension_numbers<[1], [0], [0], [1], [0, 0, 1, 1], [], []>} : vector<256x4xbf16>, vector<4x8xbf16>, vector<256x8xf32> -> vector<256x8xf32>
    %c0_3 = arith.constant 0 : index
    %c0_4 = arith.constant 0 : index
    %3 = vector.load %arg3[%c0_3, %c0_4] : memref<1x8xf32, #tpu.memory_space<vmem>>, vector<1x8xf32>
    %4 = vector.broadcast %3 : vector<1x8xf32> to vector<256x8xf32>
    %5 = arith.addf %2, %4 : vector<256x8xf32>
    %cst_5 = arith.constant 0.000000e+00 : f32
    %6 = vector.broadcast %cst_5 : f32 to vector<256x8xf32>
    %7 = arith.maximumf %5, %6 : vector<256x8xf32>
    %8 = arith.truncf %7 : vector<256x8xf32> to vector<256x8xbf16>
    %c0_6 = arith.constant 0 : index
    %c0_7 = arith.constant 0 : index
    %9 = vector.load %arg4[%c0_6, %c0_7] : memref<256x8xbf16, #tpu.memory_space<vmem>>, vector<256x8xbf16>
    tpu.vector_store %arg4[%c0_6, %c0_7], %8 {strides = array<i32>} : memref<256x8xbf16, #tpu.memory_space<vmem>>, vector<256x8xbf16>,
    return
  }
  func.func @transform_0(%arg0: i32) -> (i32, i32) {
    %c0_i32 = arith.constant 0 : i32
    %c0_i32_0 = arith.constant 0 : i32
    return %arg0, %c0_i32 : i32, i32
  }
  func.func @transform_1(%arg0: i32) -> (i32, i32) {
    %c0_i32 = arith.constant 0 : i32
    %c0_i32_0 = arith.constant 0 : i32
    %c0_i32_1 = arith.constant 0 : i32
    return %c0_i32, %c0_i32_0 : i32, i32
  }
  func.func @transform_2(%arg0: i32) -> (i32, i32) {
    %c0_i32 = arith.constant 0 : i32
    %c0_i32_0 = arith.constant 0 : i32
    %c0_i32_1 = arith.constant 0 : i32
    return %c0_i32, %c0_i32_0 : i32, i32
  }
  func.func @transform_3(%arg0: i32) -> (i32, i32) {
    %c0_i32 = arith.constant 0 : i32
    %c0_i32_0 = arith.constant 0 : i32
    return %arg0, %c0_i32 : i32, i32
  }
}

module attributes {stable_mosaic.version = 11 : i64} {
  func.func @_conv3x3_bias_relu_kernel(%arg0: i32, %arg1: memref<1x18x18x8xbf16, #tpu.memory_space<vmem>>, %arg2: memref<9x8x8xbf16, #tpu.memory_space<vmem>>, %arg3: memref<1x8xf32, #tpu.memory_space<vmem>>, %arg4: memref<1x16x16x8xbf16, #tpu.memory_space<vmem>>) attributes {dimension_semantics = [#tpu.dimension_semantics<parallel>], iteration_bounds = array<i64: 2>, scalar_prefetch = 0 : i64, scratch_operands = 0 : i64, tpu.core_type = #tpu.core_type<tc>, window_params = [{transform_indices = @transform_0, window_bounds = array<i64: 1, 18, 18, 8>}, {pipeline_mode = #tpu.pipeline_mode<synchronous>, transform_indices = @transform_1, window_bounds = array<i64: 9, 8, 8>}, {pipeline_mode = #tpu.pipeline_mode<synchronous>, transform_indices = @transform_2, window_bounds = array<i64: 1, 8>}, {transform_indices = @transform_3, window_bounds = array<i64: 1, 16, 16, 8>}]} {
    %c0 = arith.constant 0 : index
    %c0_0 = arith.constant 0 : index
    %0 = vector.load %arg3[%c0, %c0_0] : memref<1x8xf32, #tpu.memory_space<vmem>>, vector<1x8xf32>
    %c0_i32 = arith.constant 0 : i32
    %c16_i32 = arith.constant 16 : i32
    %1 = arith.addi %c0_i32, %c16_i32 : i32
    %c1_i32 = arith.constant 1 : i32
    scf.for %arg5 = %c0_i32 to %1 step %c1_i32  : i32 {
      %c1_i32_2 = arith.constant 1 : i32
      %2 = arith.muli %arg5, %c1_i32_2 : i32
      %c0_i32_3 = arith.constant 0 : i32
      %3 = arith.addi %c0_i32_3, %2 : i32
      %cst = arith.constant 0.000000e+00 : f32
      %4 = vector.broadcast %cst : f32 to vector<16x8xf32>
      %c1_i32_4 = arith.constant 1 : i32
      %5 = arith.muli %3, %c1_i32_4 : i32
      %c0_i32_5 = arith.constant 0 : i32
      %6 = arith.addi %5, %c0_i32_5 : i32
      %c0_6 = arith.constant 0 : index
      %7 = arith.index_cast %6 : i32 to index
      %c0_7 = arith.constant 0 : index
      %c0_8 = arith.constant 0 : index
      %8 = vector.load %arg1[%c0_6, %7, %c0_7, %c0_8] : memref<1x18x18x8xbf16, #tpu.memory_space<vmem>>, vector<1x1x18x8xbf16>
      %9 = vector.shape_cast %8 : vector<1x1x18x8xbf16> to vector<18x8xbf16>
      %10 = vector.extract_strided_slice %9 {offsets = [0, 0], sizes = [16, 8], strides = [1, 1]} : vector<18x8xbf16> to vector<16x8xbf16>
      %c0_9 = arith.constant 0 : index
      %c0_10 = arith.constant 0 : index
      %c0_11 = arith.constant 0 : index
      %11 = vector.load %arg2[%c0_9, %c0_10, %c0_11] : memref<9x8x8xbf16, #tpu.memory_space<vmem>>, vector<1x8x8xbf16>
      %12 = vector.shape_cast %11 : vector<1x8x8xbf16> to vector<8x8xbf16>
      %cst_12 = arith.constant dense<0.000000e+00> : vector<16x8xf32>
      %13 = tpu.matmul %10, %12, %cst_12 {dimension_numbers = #tpu.dot_dimension_numbers<[1], [0], [0], [1], [0, 0, 1, 1], [], []>} : vector<16x8xbf16>, vector<8x8xbf16>, vector<16x8xf32> -> vector<16x8xf32>
      %14 = arith.addf %4, %13 : vector<16x8xf32>
      %15 = vector.extract_strided_slice %9 {offsets = [1, 0], sizes = [16, 8], strides = [1, 1]} : vector<18x8xbf16> to vector<16x8xbf16>
      %c1 = arith.constant 1 : index
      %c0_13 = arith.constant 0 : index
      %c0_14 = arith.constant 0 : index
      %16 = vector.load %arg2[%c1, %c0_13, %c0_14] : memref<9x8x8xbf16, #tpu.memory_space<vmem>>, vector<1x8x8xbf16>
      %17 = vector.shape_cast %16 : vector<1x8x8xbf16> to vector<8x8xbf16>
      %cst_15 = arith.constant dense<0.000000e+00> : vector<16x8xf32>
      %18 = tpu.matmul %15, %17, %cst_15 {dimension_numbers = #tpu.dot_dimension_numbers<[1], [0], [0], [1], [0, 0, 1, 1], [], []>} : vector<16x8xbf16>, vector<8x8xbf16>, vector<16x8xf32> -> vector<16x8xf32>
      %19 = arith.addf %14, %18 : vector<16x8xf32>
      %20 = vector.extract_strided_slice %9 {offsets = [2, 0], sizes = [16, 8], strides = [1, 1]} : vector<18x8xbf16> to vector<16x8xbf16>
      %c2 = arith.constant 2 : index
      %c0_16 = arith.constant 0 : index
      %c0_17 = arith.constant 0 : index
      %21 = vector.load %arg2[%c2, %c0_16, %c0_17] : memref<9x8x8xbf16, #tpu.memory_space<vmem>>, vector<1x8x8xbf16>
      %22 = vector.shape_cast %21 : vector<1x8x8xbf16> to vector<8x8xbf16>
      %cst_18 = arith.constant dense<0.000000e+00> : vector<16x8xf32>
      %23 = tpu.matmul %20, %22, %cst_18 {dimension_numbers = #tpu.dot_dimension_numbers<[1], [0], [0], [1], [0, 0, 1, 1], [], []>} : vector<16x8xbf16>, vector<8x8xbf16>, vector<16x8xf32> -> vector<16x8xf32>
      %24 = arith.addf %19, %23 : vector<16x8xf32>
      %c1_i32_19 = arith.constant 1 : i32
      %25 = arith.muli %3, %c1_i32_19 : i32
      %c1_i32_20 = arith.constant 1 : i32
      %26 = arith.addi %25, %c1_i32_20 : i32
      %c0_21 = arith.constant 0 : index
      %27 = arith.index_cast %26 : i32 to index
      %c0_22 = arith.constant 0 : index
      %c0_23 = arith.constant 0 : index
      %28 = vector.load %arg1[%c0_21, %27, %c0_22, %c0_23] : memref<1x18x18x8xbf16, #tpu.memory_space<vmem>>, vector<1x1x18x8xbf16>
      %29 = vector.shape_cast %28 : vector<1x1x18x8xbf16> to vector<18x8xbf16>
      %30 = vector.extract_strided_slice %29 {offsets = [0, 0], sizes = [16, 8], strides = [1, 1]} : vector<18x8xbf16> to vector<16x8xbf16>
      %c3 = arith.constant 3 : index
      %c0_24 = arith.constant 0 : index
      %c0_25 = arith.constant 0 : index
      %31 = vector.load %arg2[%c3, %c0_24, %c0_25] : memref<9x8x8xbf16, #tpu.memory_space<vmem>>, vector<1x8x8xbf16>
      %32 = vector.shape_cast %31 : vector<1x8x8xbf16> to vector<8x8xbf16>
      %cst_26 = arith.constant dense<0.000000e+00> : vector<16x8xf32>
      %33 = tpu.matmul %30, %32, %cst_26 {dimension_numbers = #tpu.dot_dimension_numbers<[1], [0], [0], [1], [0, 0, 1, 1], [], []>} : vector<16x8xbf16>, vector<8x8xbf16>, vector<16x8xf32> -> vector<16x8xf32>
      %34 = arith.addf %24, %33 : vector<16x8xf32>
      %35 = vector.extract_strided_slice %29 {offsets = [1, 0], sizes = [16, 8], strides = [1, 1]} : vector<18x8xbf16> to vector<16x8xbf16>
      %c4 = arith.constant 4 : index
      %c0_27 = arith.constant 0 : index
      %c0_28 = arith.constant 0 : index
      %36 = vector.load %arg2[%c4, %c0_27, %c0_28] : memref<9x8x8xbf16, #tpu.memory_space<vmem>>, vector<1x8x8xbf16>
      %37 = vector.shape_cast %36 : vector<1x8x8xbf16> to vector<8x8xbf16>
      %cst_29 = arith.constant dense<0.000000e+00> : vector<16x8xf32>
      %38 = tpu.matmul %35, %37, %cst_29 {dimension_numbers = #tpu.dot_dimension_numbers<[1], [0], [0], [1], [0, 0, 1, 1], [], []>} : vector<16x8xbf16>, vector<8x8xbf16>, vector<16x8xf32> -> vector<16x8xf32>
      %39 = arith.addf %34, %38 : vector<16x8xf32>
      %40 = vector.extract_strided_slice %29 {offsets = [2, 0], sizes = [16, 8], strides = [1, 1]} : vector<18x8xbf16> to vector<16x8xbf16>
      %c5 = arith.constant 5 : index
      %c0_30 = arith.constant 0 : index
      %c0_31 = arith.constant 0 : index
      %41 = vector.load %arg2[%c5, %c0_30, %c0_31] : memref<9x8x8xbf16, #tpu.memory_space<vmem>>, vector<1x8x8xbf16>
      %42 = vector.shape_cast %41 : vector<1x8x8xbf16> to vector<8x8xbf16>
      %cst_32 = arith.constant dense<0.000000e+00> : vector<16x8xf32>
      %43 = tpu.matmul %40, %42, %cst_32 {dimension_numbers = #tpu.dot_dimension_numbers<[1], [0], [0], [1], [0, 0, 1, 1], [], []>} : vector<16x8xbf16>, vector<8x8xbf16>, vector<16x8xf32> -> vector<16x8xf32>
      %44 = arith.addf %39, %43 : vector<16x8xf32>
      %c1_i32_33 = arith.constant 1 : i32
      %45 = arith.muli %3, %c1_i32_33 : i32
      %c2_i32 = arith.constant 2 : i32
      %46 = arith.addi %45, %c2_i32 : i32
      %c0_34 = arith.constant 0 : index
      %47 = arith.index_cast %46 : i32 to index
      %c0_35 = arith.constant 0 : index
      %c0_36 = arith.constant 0 : index
      %48 = vector.load %arg1[%c0_34, %47, %c0_35, %c0_36] : memref<1x18x18x8xbf16, #tpu.memory_space<vmem>>, vector<1x1x18x8xbf16>
      %49 = vector.shape_cast %48 : vector<1x1x18x8xbf16> to vector<18x8xbf16>
      %50 = vector.extract_strided_slice %49 {offsets = [0, 0], sizes = [16, 8], strides = [1, 1]} : vector<18x8xbf16> to vector<16x8xbf16>
      %c6 = arith.constant 6 : index
      %c0_37 = arith.constant 0 : index
      %c0_38 = arith.constant 0 : index
      %51 = vector.load %arg2[%c6, %c0_37, %c0_38] : memref<9x8x8xbf16, #tpu.memory_space<vmem>>, vector<1x8x8xbf16>
      %52 = vector.shape_cast %51 : vector<1x8x8xbf16> to vector<8x8xbf16>
      %cst_39 = arith.constant dense<0.000000e+00> : vector<16x8xf32>
      %53 = tpu.matmul %50, %52, %cst_39 {dimension_numbers = #tpu.dot_dimension_numbers<[1], [0], [0], [1], [0, 0, 1, 1], [], []>} : vector<16x8xbf16>, vector<8x8xbf16>, vector<16x8xf32> -> vector<16x8xf32>
      %54 = arith.addf %44, %53 : vector<16x8xf32>
      %55 = vector.extract_strided_slice %49 {offsets = [1, 0], sizes = [16, 8], strides = [1, 1]} : vector<18x8xbf16> to vector<16x8xbf16>
      %c7 = arith.constant 7 : index
      %c0_40 = arith.constant 0 : index
      %c0_41 = arith.constant 0 : index
      %56 = vector.load %arg2[%c7, %c0_40, %c0_41] : memref<9x8x8xbf16, #tpu.memory_space<vmem>>, vector<1x8x8xbf16>
      %57 = vector.shape_cast %56 : vector<1x8x8xbf16> to vector<8x8xbf16>
      %cst_42 = arith.constant dense<0.000000e+00> : vector<16x8xf32>
      %58 = tpu.matmul %55, %57, %cst_42 {dimension_numbers = #tpu.dot_dimension_numbers<[1], [0], [0], [1], [0, 0, 1, 1], [], []>} : vector<16x8xbf16>, vector<8x8xbf16>, vector<16x8xf32> -> vector<16x8xf32>
      %59 = arith.addf %54, %58 : vector<16x8xf32>
      %60 = vector.extract_strided_slice %49 {offsets = [2, 0], sizes = [16, 8], strides = [1, 1]} : vector<18x8xbf16> to vector<16x8xbf16>
      %c8 = arith.constant 8 : index
      %c0_43 = arith.constant 0 : index
      %c0_44 = arith.constant 0 : index
      %61 = vector.load %arg2[%c8, %c0_43, %c0_44] : memref<9x8x8xbf16, #tpu.memory_space<vmem>>, vector<1x8x8xbf16>
      %62 = vector.shape_cast %61 : vector<1x8x8xbf16> to vector<8x8xbf16>
      %cst_45 = arith.constant dense<0.000000e+00> : vector<16x8xf32>
      %63 = tpu.matmul %60, %62, %cst_45 {dimension_numbers = #tpu.dot_dimension_numbers<[1], [0], [0], [1], [0, 0, 1, 1], [], []>} : vector<16x8xbf16>, vector<8x8xbf16>, vector<16x8xf32> -> vector<16x8xf32>
      %64 = arith.addf %59, %63 : vector<16x8xf32>
      %65 = vector.broadcast %0 : vector<1x8xf32> to vector<16x8xf32>
      %66 = arith.addf %64, %65 : vector<16x8xf32>
      %cst_46 = arith.constant 0.000000e+00 : f32
      %67 = vector.broadcast %cst_46 : f32 to vector<16x8xf32>
      %68 = arith.maximumf %66, %67 : vector<16x8xf32>
      %69 = vector.shape_cast %68 : vector<16x8xf32> to vector<1x16x8xf32>
      %70 = arith.truncf %69 : vector<1x16x8xf32> to vector<1x16x8xbf16>
      %c0_47 = arith.constant 0 : index
      %71 = arith.index_cast %3 : i32 to index
      %c0_48 = arith.constant 0 : index
      %c0_49 = arith.constant 0 : index
      %72 = vector.load %arg4[%c0_47, %71, %c0_48, %c0_49] : memref<1x16x16x8xbf16, #tpu.memory_space<vmem>>, vector<1x1x16x8xbf16>
      %73 = vector.shape_cast %72 : vector<1x1x16x8xbf16> to vector<1x16x8xbf16>
      %74 = vector.shape_cast %70 : vector<1x16x8xbf16> to vector<1x1x16x8xbf16>
      tpu.vector_store %arg4[%c0_47, %71, %c0_48, %c0_49], %74 {strides = array<i32>} : memref<1x16x16x8xbf16, #tpu.memory_space<vmem>>, vector<1x1x16x8xbf16>,
    }
    %c16_i32_1 = arith.constant 16 : i32
    return
  }
  func.func @transform_0(%arg0: i32) -> (i32, i32, i32, i32) {
    %c0_i32 = arith.constant 0 : i32
    %c0_i32_0 = arith.constant 0 : i32
    %c0_i32_1 = arith.constant 0 : i32
    %c0_i32_2 = arith.constant 0 : i32
    return %arg0, %c0_i32, %c0_i32_0, %c0_i32_1 : i32, i32, i32, i32
  }
  func.func @transform_1(%arg0: i32) -> (i32, i32, i32) {
    %c0_i32 = arith.constant 0 : i32
    %c0_i32_0 = arith.constant 0 : i32
    %c0_i32_1 = arith.constant 0 : i32
    %c0_i32_2 = arith.constant 0 : i32
    return %c0_i32, %c0_i32_0, %c0_i32_1 : i32, i32, i32
  }
  func.func @transform_2(%arg0: i32) -> (i32, i32) {
    %c0_i32 = arith.constant 0 : i32
    %c0_i32_0 = arith.constant 0 : i32
    %c0_i32_1 = arith.constant 0 : i32
    return %c0_i32, %c0_i32_0 : i32, i32
  }
  func.func @transform_3(%arg0: i32) -> (i32, i32, i32, i32) {
    %c0_i32 = arith.constant 0 : i32
    %c0_i32_0 = arith.constant 0 : i32
    %c0_i32_1 = arith.constant 0 : i32
    %c0_i32_2 = arith.constant 0 : i32
    return %arg0, %c0_i32, %c0_i32_0, %c0_i32_1 : i32, i32, i32, i32
  }
}

module attributes {stable_mosaic.version = 11 : i64} {
  func.func @_conv3_downsample_residual_kernel(%arg0: i32, %arg1: memref<256x8xbf16, #tpu.memory_space<vmem>>, %arg2: memref<256x4xbf16, #tpu.memory_space<vmem>>, %arg3: memref<8x32xbf16, #tpu.memory_space<vmem>>, %arg4: memref<1x32xf32, #tpu.memory_space<vmem>>, %arg5: memref<4x32xbf16, #tpu.memory_space<vmem>>, %arg6: memref<1x32xf32, #tpu.memory_space<vmem>>, %arg7: memref<256x32xf32, #tpu.memory_space<vmem>>) attributes {dimension_semantics = [#tpu.dimension_semantics<parallel>], iteration_bounds = array<i64: 2>, scalar_prefetch = 0 : i64, scratch_operands = 0 : i64, tpu.core_type = #tpu.core_type<tc>, window_params = [{transform_indices = @transform_0, window_bounds = array<i64: 256, 8>}, {transform_indices = @transform_1, window_bounds = array<i64: 256, 4>}, {pipeline_mode = #tpu.pipeline_mode<synchronous>, transform_indices = @transform_2, window_bounds = array<i64: 8, 32>}, {pipeline_mode = #tpu.pipeline_mode<synchronous>, transform_indices = @transform_3, window_bounds = array<i64: 1, 32>}, {pipeline_mode = #tpu.pipeline_mode<synchronous>, transform_indices = @transform_4, window_bounds = array<i64: 4, 32>}, {pipeline_mode = #tpu.pipeline_mode<synchronous>, transform_indices = @transform_5, window_bounds = array<i64: 1, 32>}, {transform_indices = @transform_6, window_bounds = array<i64: 256, 32>}]} {
    %c0 = arith.constant 0 : index
    %c0_0 = arith.constant 0 : index
    %0 = vector.load %arg1[%c0, %c0_0] : memref<256x8xbf16, #tpu.memory_space<vmem>>, vector<256x8xbf16>
    %c0_1 = arith.constant 0 : index
    %c0_2 = arith.constant 0 : index
    %1 = vector.load %arg3[%c0_1, %c0_2] : memref<8x32xbf16, #tpu.memory_space<vmem>>, vector<8x32xbf16>
    %cst = arith.constant dense<0.000000e+00> : vector<256x32xf32>
    %2 = tpu.matmul %0, %1, %cst {dimension_numbers = #tpu.dot_dimension_numbers<[1], [0], [0], [1], [0, 0, 1, 1], [], []>} : vector<256x8xbf16>, vector<8x32xbf16>, vector<256x32xf32> -> vector<256x32xf32>
    %c0_3 = arith.constant 0 : index
    %c0_4 = arith.constant 0 : index
    %3 = vector.load %arg2[%c0_3, %c0_4] : memref<256x4xbf16, #tpu.memory_space<vmem>>, vector<256x4xbf16>
    %c0_5 = arith.constant 0 : index
    %c0_6 = arith.constant 0 : index
    %4 = vector.load %arg5[%c0_5, %c0_6] : memref<4x32xbf16, #tpu.memory_space<vmem>>, vector<4x32xbf16>
    %cst_7 = arith.constant dense<0.000000e+00> : vector<256x32xf32>
    %5 = tpu.matmul %3, %4, %cst_7 {dimension_numbers = #tpu.dot_dimension_numbers<[1], [0], [0], [1], [0, 0, 1, 1], [], []>} : vector<256x4xbf16>, vector<4x32xbf16>, vector<256x32xf32> -> vector<256x32xf32>
    %6 = arith.addf %2, %5 : vector<256x32xf32>
    %c0_8 = arith.constant 0 : index
    %c0_9 = arith.constant 0 : index
    %7 = vector.load %arg4[%c0_8, %c0_9] : memref<1x32xf32, #tpu.memory_space<vmem>>, vector<1x32xf32>
    %8 = vector.broadcast %7 : vector<1x32xf32> to vector<256x32xf32>
    %9 = arith.addf %6, %8 : vector<256x32xf32>
    %c0_10 = arith.constant 0 : index
    %c0_11 = arith.constant 0 : index
    %10 = vector.load %arg6[%c0_10, %c0_11] : memref<1x32xf32, #tpu.memory_space<vmem>>, vector<1x32xf32>
    %11 = vector.broadcast %10 : vector<1x32xf32> to vector<256x32xf32>
    %12 = arith.addf %9, %11 : vector<256x32xf32>
    %cst_12 = arith.constant 0.000000e+00 : f32
    %13 = vector.broadcast %cst_12 : f32 to vector<256x32xf32>
    %14 = arith.maximumf %12, %13 : vector<256x32xf32>
    %c0_13 = arith.constant 0 : index
    %c0_14 = arith.constant 0 : index
    %15 = vector.load %arg7[%c0_13, %c0_14] : memref<256x32xf32, #tpu.memory_space<vmem>>, vector<256x32xf32>
    tpu.vector_store %arg7[%c0_13, %c0_14], %14 {strides = array<i32>} : memref<256x32xf32, #tpu.memory_space<vmem>>, vector<256x32xf32>,
    return
  }
  func.func @transform_0(%arg0: i32) -> (i32, i32) {
    %c0_i32 = arith.constant 0 : i32
    %c0_i32_0 = arith.constant 0 : i32
    return %arg0, %c0_i32 : i32, i32
  }
  func.func @transform_1(%arg0: i32) -> (i32, i32) {
    %c0_i32 = arith.constant 0 : i32
    %c0_i32_0 = arith.constant 0 : i32
    return %arg0, %c0_i32 : i32, i32
  }
  func.func @transform_2(%arg0: i32) -> (i32, i32) {
    %c0_i32 = arith.constant 0 : i32
    %c0_i32_0 = arith.constant 0 : i32
    %c0_i32_1 = arith.constant 0 : i32
    return %c0_i32, %c0_i32_0 : i32, i32
  }
  func.func @transform_3(%arg0: i32) -> (i32, i32) {
    %c0_i32 = arith.constant 0 : i32
    %c0_i32_0 = arith.constant 0 : i32
    %c0_i32_1 = arith.constant 0 : i32
    return %c0_i32, %c0_i32_0 : i32, i32
  }
  func.func @transform_4(%arg0: i32) -> (i32, i32) {
    %c0_i32 = arith.constant 0 : i32
    %c0_i32_0 = arith.constant 0 : i32
    %c0_i32_1 = arith.constant 0 : i32
    return %c0_i32, %c0_i32_0 : i32, i32
  }
  func.func @transform_5(%arg0: i32) -> (i32, i32) {
    %c0_i32 = arith.constant 0 : i32
    %c0_i32_0 = arith.constant 0 : i32
    %c0_i32_1 = arith.constant 0 : i32
    return %c0_i32, %c0_i32_0 : i32, i32
  }
  func.func @transform_6(%arg0: i32) -> (i32, i32) {
    %c0_i32 = arith.constant 0 : i32
    %c0_i32_0 = arith.constant 0 : i32
    return %arg0, %c0_i32 : i32, i32
  }
}

</mosaic_0001>

<bundles_post_ra>
// kernel: bottleneck_pallas.3
= control target key start
LH: loop header
LB: loop body
LE: loop exit
PB: predicated region body
PF: predicated region fallthrough
CT: control target
= control target key end

     0   :  { %s973_s12 = smov 0   ;;  %s1137_s0 = inlined_call_operand.vmem [shape: bf16[512,4], index: 0, kind: input, shape index: {}]   ;;  %s1138_s1 = inlined_call_operand.vmem [shape: bf16[4,8], index: 1, kind: input, shape index: {}]   ;;  %s1139_s2 = inlined_call_operand.vmem [shape: f32[1,8], index: 2, kind: input, shape index: {}]   ;;  %s1140_s3 = inlined_call_operand.vmem [shape: bf16[512,8], index: 3, kind: output, shape index: {}]  }
   0x1 LB: > { %s758_s13 = sadd.s32 4294967295, %s951_s12   ;;  %p762_p0 = scmp.ge.s32.totalorder %s951_s12, 1  ;;  %s951_s12 = sphi %s973_s12, %s13_s12  }
   0x2   : > { %p138_p1 = scmp.lt.s32.totalorder %s951_s12, 3 }
   0x4   : > { %p139_p2 = pnand %p762_p0, %p138_p1 }
   0x5   : > { %v207_v0 = vld [vmem:[%s1138_s1] sm:$0x3] (!%p139_p2)  ;;  %vm344_vm0 = vcmask (!%p139_p2), 1041408   ;;  %s763_s16 = sshll.u32 (!%p139_p2), %s758_s13, 5  ;;  %vm295_vm1 = vcmask (!%p139_p2), 31744   ;;  %vm669_vm2 = vcmask (!%p139_p2), 60416  }
   0x6   : > { %142 = sbr.rel (%p139_p2) target bundleno = 265 (0x109), region = 32  ;;  %919 = vmatprep.subr.msk.bf16.mxu0 (!%p139_p2), %vm344_vm0, %v207_v0  ;;  %920 = vmatprep.subr.msk.bf16.mxu1 (!%p139_p2), %vm344_vm0, %v207_v0  ;;  %v346_v1 = vsel (!%p139_p2), %vm344_vm0, %v207_v0, 0  ;;  %p163_p3 = scmp.lt.s32.totalorder (!%p139_p2), %s763_s16, 63  ;;  %v1029_v18 = vld [vmem:[%s1139_s2] ss:$0 sm:$0xff] (!%p139_p2) }
   0x7   : > { %884 = vmatpush3.bf16.msra.mxu0 (!%p139_p2), %v346_v1  ;;  %918 = vmatpush3.bf16.msra.mxu1 (!%p139_p2), %v346_v1 }
   0xd   : > { %s1142_s16 = smov (!%p163_p3, %s763_s16), 63 }
   0xe   : > { %s764_s17 = sshll.u32 %s1142_s16, 2 }
   0xf   : > { %s992_s20 = scalar_lea.vmem %s1137_s0, %s764_s17  ;;  %s1041_s25 = scalar_lea.vmem %s1140_s3, %s764_s17 }
  0x10   : > { %v929_v2 = vld [vmem:[%s992_s20] sm:$0xff]   ;;  %v931_v4 = vld [vmem:[%s992_s20 + $0x8] sm:$0xff]   ;;  %v933_v6 = vld [vmem:[%s992_s20 + $0x10] sm:$0xff]  }
  0x11   : > { %v930_v3 = vld [vmem:[%s992_s20 + $0x40] sm:$0xff]   ;;  %885 = vmatprep.mubr.msk.bf16.mxu0 %vm295_vm1, %v929_v2  ;;  %v932_v5 = vld [vmem:[%s992_s20 + $0x48] sm:$0xff]   ;;  %v934_v7 = vld [vmem:[%s992_s20 + $0x50] sm:$0xff]  }
  0x12   : > { %901 = vmatprep.mubr.msk.bf16.mxu1 %vm295_vm1, %v930_v3  ;;  %886 = vmatmul.mubr.msk.bf16.vlgmr.msra.gmra.mrb[0].mxu0 %vm295_vm1, %v931_v4  ;;  %v935_v8 = vld [vmem:[%s992_s20 + $0x18] sm:$0xff]   ;;  %v937_v10 = vld [vmem:[%s992_s20 + $0x20] sm:$0xff]   ;;  %v939_v12 = vld [vmem:[%s992_s20 + $0x28] sm:$0xff]  }
  0x13   : > { %902 = vmatmul.mubr.msk.bf16.vlgmr.msra.gmra.mrb[0].mxu1 %vm295_vm1, %v932_v5  ;;  %889 = vmatprep.mubr.msk.bf16.mxu0 %vm295_vm1, %v933_v6  ;;  %v936_v9 = vld [vmem:[%s992_s20 + $0x58] sm:$0xff]   ;;  %v938_v11 = vld [vmem:[%s992_s20 + $0x60] sm:$0xff]   ;;  %v940_v13 = vld [vmem:[%s992_s20 + $0x68] sm:$0xff]  }
  0x14   : > { %905 = vmatprep.mubr.msk.bf16.mxu1 %vm295_vm1, %v934_v7  ;;  %v941_v14 = vld [vmem:[%s992_s20 + $0x30] sm:$0xff]   ;;  %v943_v16 = vld [vmem:[%s992_s20 + $0x38] sm:$0xff]  }
  0x15   : > { %v942_v15 = vld [vmem:[%s992_s20 + $0x70] sm:$0xff]   ;;  %v944_v17 = vld [vmem:[%s992_s20 + $0x78] sm:$0xff]  }
  0x1a   : > { %890 = vmatmul.mubr.msk.bf16.gmra.mrb[4].mxu0 %vm295_vm1, %v935_v8 }
  0x1b   : > { %906 = vmatmul.mubr.msk.bf16.gmra.mrb[4].mxu1 %vm295_vm1, %v936_v9  ;;  %893 = vmatprep.mubr.msk.bf16.mxu0 %vm295_vm1, %v937_v10 }
  0x1c   : > { %909 = vmatprep.mubr.msk.bf16.mxu1 %vm295_vm1, %v938_v11 }
  0x22   : > { %894 = vmatmul.mubr.msk.bf16.gmra.mrb[8].mxu0 %vm295_vm1, %v939_v12 }
  0x23   : > { %910 = vmatmul.mubr.msk.bf16.gmra.mrb[8].mxu1 %vm295_vm1, %v940_v13  ;;  %897 = vmatprep.mubr.msk.bf16.mxu0 %vm295_vm1, %v941_v14 }
  0x24   : > { %913 = vmatprep.mubr.msk.bf16.mxu1 %vm295_vm1, %v942_v15 }
  0x2a   : > { %898 = vmatmul.mubr.msk.bf16.gmra.mrb[12].mxu0 %vm295_vm1, %v943_v16 }
  0x2b   : > { %914 = vmatmul.mubr.msk.bf16.gmra.mrb[12].mxu1 %vm295_vm1, %v944_v17 }
  0xe5   : > { %v887_v19 = vpop.f32.mrb[0].mxu0 }
  0xe6   : > { %v391_v20 = vadd.f32 %v887_v19, %v1029_v18  ;;  %v903_v21 = vpop.f32.mrb[0].mxu1  ;;  %v382_v22 = vpop.f32.mrb[1].mxu0 }
  0xe7   : > { %v455_v23 = vadd.f32 %v903_v21, %v1029_v18  ;;  %v383_v24 = vadd.f32 %v1029_v18, %v382_v22  ;;  %v446_v25 = vpop.f32.mrb[1].mxu1  ;;  %v888_v26 = vpop.f32.mrb[2].mxu0 }
  0xe8   : > { %v511_v27 = vmax.f32 %v391_v20, 0.0  ;;  %v447_v28 = vadd.f32 %v1029_v18, %v446_v25  ;;  %v394_v29 = vadd.f32 %v888_v26, %v1029_v18  ;;  %v904_v30 = vpop.f32.mrb[2].mxu1  ;;  %v385_v31 = vpop.f32.mrb[3].mxu0 }
  0xe9   : > { %v527_v32 = vmax.f32 %v455_v23, 0.0  ;;  %v509_v33 = vmax.f32 %v383_v24, 0.0  ;;  %v458_v34 = vadd.f32 %v904_v30, %v1029_v18  ;;  %v386_v35 = vadd.f32 %v1029_v18, %v385_v31  ;;  %v449_v36 = vpop.f32.mrb[3].mxu1 }
  0xea   : > { %v836_v37 = vpack.c.bf16 %v511_v27, %v511_v27  ;;  %v525_v38 = vmax.f32 %v447_v28, 0.0  ;;  %v512_v39 = vmax.f32 %v394_v29, 0.0  ;;  %v450_v40 = vadd.f32 %v1029_v18, %v449_v36 }
  0xeb   : > { %v852_v41 = vpack.c.bf16 %v527_v32, %v527_v32  ;;  %v834_v42 = vpack.c.bf16 %v509_v33, %v509_v33  ;;  %v528_v43 = vmax.f32 %v458_v34, 0.0  ;;  %v510_v44 = vmax.f32 %v386_v35, 0.0 }
  0xec   : > { %672 = vst.msk [vmem:[%s1041_s25 + $0x8] sm:$0xf] %vm669_vm2, %v836_v37  ;;  %v850_v45 = vpack.c.bf16 %v525_v38, %v525_v38  ;;  %v837_v46 = vpack.c.bf16 %v512_v39, %v512_v39  ;;  %v526_v47 = vmax.f32 %v450_v40, 0.0 }
  0xed   : > { %688 = vst.msk [vmem:[%s1041_s25 + $0x48] sm:$0xf] %vm669_vm2, %v852_v41  ;;  %670 = vst.msk [vmem:[%s1041_s25] sm:$0xf] %vm669_vm2, %v834_v42  ;;  %v853_v48 = vpack.c.bf16 %v528_v43, %v528_v43  ;;  %v835_v49 = vpack.c.bf16 %v510_v44, %v510_v44  ;;  %v891_v50 = vpop.f32.mrb[4].mxu0 }
  0xee   : > { %686 = vst.msk [vmem:[%s1041_s25 + $0x40] sm:$0xf] %vm669_vm2, %v850_v45  ;;  %673 = vst.msk [vmem:[%s1041_s25 + $0xc] sm:$0xf] %vm669_vm2, %v837_v46  ;;  %v851_v51 = vpack.c.bf16 %v526_v47, %v526_v47  ;;  %v407_v52 = vadd.f32 %v891_v50, %v1029_v18  ;;  %v907_v53 = vpop.f32.mrb[4].mxu1  ;;  %v398_v54 = vpop.f32.mrb[5].mxu0 }
  0xef   : > { %689 = vst.msk [vmem:[%s1041_s25 + $0x4c] sm:$0xf] %vm669_vm2, %v853_v48  ;;  %671 = vst.msk [vmem:[%s1041_s25 + $0x4] sm:$0xf] %vm669_vm2, %v835_v49  ;;  %v471_v55 = vadd.f32 %v907_v53, %v1029_v18  ;;  %v399_v56 = vadd.f32 %v1029_v18, %v398_v54  ;;  %v462_v57 = vpop.f32.mrb[5].mxu1  ;;  %v892_v58 = vpop.f32.mrb[6].mxu0 }
  0xf0   : > { %687 = vst.msk [vmem:[%s1041_s25 + $0x44] sm:$0xf] %vm669_vm2, %v851_v51  ;;  %v515_v59 = vmax.f32 %v407_v52, 0.0  ;;  %v463_v60 = vadd.f32 %v1029_v18, %v462_v57  ;;  %v410_v61 = vadd.f32 %v892_v58, %v1029_v18  ;;  %v908_v62 = vpop.f32.mrb[6].mxu1  ;;  %v401_v63 = vpop.f32.mrb[7].mxu0 }
  0xf1   : > { %v531_v0 = vmax.f32 %v471_v55, 0.0  ;;  %v513_v1 = vmax.f32 %v399_v56, 0.0  ;;  %v474_v2 = vadd.f32 %v908_v62, %v1029_v18  ;;  %v402_v3 = vadd.f32 %v1029_v18, %v401_v63  ;;  %v465_v4 = vpop.f32.mrb[7].mxu1 }
  0xf2   : > { %v840_v5 = vpack.c.bf16 %v515_v59, %v515_v59  ;;  %v529_v6 = vmax.f32 %v463_v60, 0.0  ;;  %v516_v7 = vmax.f32 %v410_v61, 0.0  ;;  %v466_v8 = vadd.f32 %v1029_v18, %v465_v4 }
  0xf3   : > { %v856_v9 = vpack.c.bf16 %v531_v0, %v531_v0  ;;  %v838_v10 = vpack.c.bf16 %v513_v1, %v513_v1  ;;  %v532_v11 = vmax.f32 %v474_v2, 0.0  ;;  %v514_v12 = vmax.f32 %v402_v3, 0.0 }
  0xf4   : > { %676 = vst.msk [vmem:[%s1041_s25 + $0x18] sm:$0xf] %vm669_vm2, %v840_v5  ;;  %v854_v13 = vpack.c.bf16 %v529_v6, %v529_v6  ;;  %v841_v14 = vpack.c.bf16 %v516_v7, %v516_v7  ;;  %v530_v15 = vmax.f32 %v466_v8, 0.0 }
  0xf5   : > { %692 = vst.msk [vmem:[%s1041_s25 + $0x58] sm:$0xf] %vm669_vm2, %v856_v9  ;;  %674 = vst.msk [vmem:[%s1041_s25 + $0x10] sm:$0xf] %vm669_vm2, %v838_v10  ;;  %v857_v16 = vpack.c.bf16 %v532_v11, %v532_v11  ;;  %v839_v17 = vpack.c.bf16 %v514_v12, %v514_v12  ;;  %v895_v19 = vpop.f32.mrb[8].mxu0 }
  0xf6   : > { %690 = vst.msk [vmem:[%s1041_s25 + $0x50] sm:$0xf] %vm669_vm2, %v854_v13  ;;  %677 = vst.msk [vmem:[%s1041_s25 + $0x1c] sm:$0xf] %vm669_vm2, %v841_v14  ;;  %v855_v20 = vpack.c.bf16 %v530_v15, %v530_v15  ;;  %v423_v21 = vadd.f32 %v895_v19, %v1029_v18  ;;  %v911_v22 = vpop.f32.mrb[8].mxu1  ;;  %v414_v23 = vpop.f32.mrb[9].mxu0 }
  0xf7   : > { %693 = vst.msk [vmem:[%s1041_s25 + $0x5c] sm:$0xf] %vm669_vm2, %v857_v16  ;;  %675 = vst.msk [vmem:[%s1041_s25 + $0x14] sm:$0xf] %vm669_vm2, %v839_v17  ;;  %v487_v24 = vadd.f32 %v911_v22, %v1029_v18  ;;  %v415_v25 = vadd.f32 %v1029_v18, %v414_v23  ;;  %v478_v26 = vpop.f32.mrb[9].mxu1  ;;  %v896_v27 = vpop.f32.mrb[10].mxu0 }
  0xf8   : > { %691 = vst.msk [vmem:[%s1041_s25 + $0x54] sm:$0xf] %vm669_vm2, %v855_v20  ;;  %v519_v28 = vmax.f32 %v423_v21, 0.0  ;;  %v479_v29 = vadd.f32 %v1029_v18, %v478_v26  ;;  %v426_v30 = vadd.f32 %v896_v27, %v1029_v18  ;;  %v912_v31 = vpop.f32.mrb[10].mxu1  ;;  %v417_v32 = vpop.f32.mrb[11].mxu0 }
  0xf9   : > { %v535_v33 = vmax.f32 %v487_v24, 0.0  ;;  %v517_v34 = vmax.f32 %v415_v25, 0.0  ;;  %v490_v35 = vadd.f32 %v912_v31, %v1029_v18  ;;  %v418_v36 = vadd.f32 %v1029_v18, %v417_v32  ;;  %v481_v37 = vpop.f32.mrb[11].mxu1 }
  0xfa   : > { %v844_v38 = vpack.c.bf16 %v519_v28, %v519_v28  ;;  %v533_v39 = vmax.f32 %v479_v29, 0.0  ;;  %v520_v40 = vmax.f32 %v426_v30, 0.0  ;;  %v482_v41 = vadd.f32 %v1029_v18, %v481_v37 }
  0xfb   : > { %v860_v42 = vpack.c.bf16 %v535_v33, %v535_v33  ;;  %v842_v43 = vpack.c.bf16 %v517_v34, %v517_v34  ;;  %v536_v44 = vmax.f32 %v490_v35, 0.0  ;;  %v518_v45 = vmax.f32 %v418_v36, 0.0 }
  0xfc   : > { %680 = vst.msk [vmem:[%s1041_s25 + $0x28] sm:$0xf] %vm669_vm2, %v844_v38  ;;  %v858_v46 = vpack.c.bf16 %v533_v39, %v533_v39  ;;  %v845_v47 = vpack.c.bf16 %v520_v40, %v520_v40  ;;  %v534_v48 = vmax.f32 %v482_v41, 0.0 }
  0xfd   : > { %696 = vst.msk [vmem:[%s1041_s25 + $0x68] sm:$0xf] %vm669_vm2, %v860_v42  ;;  %678 = vst.msk [vmem:[%s1041_s25 + $0x20] sm:$0xf] %vm669_vm2, %v842_v43  ;;  %v861_v49 = vpack.c.bf16 %v536_v44, %v536_v44  ;;  %v843_v50 = vpack.c.bf16 %v518_v45, %v518_v45  ;;  %v899_v51 = vpop.f32.mrb[12].mxu0 }
  0xfe   : > { %694 = vst.msk [vmem:[%s1041_s25 + $0x60] sm:$0xf] %vm669_vm2, %v858_v46  ;;  %681 = vst.msk [vmem:[%s1041_s25 + $0x2c] sm:$0xf] %vm669_vm2, %v845_v47  ;;  %v859_v52 = vpack.c.bf16 %v534_v48, %v534_v48  ;;  %v439_v53 = vadd.f32 %v899_v51, %v1029_v18  ;;  %v915_v54 = vpop.f32.mrb[12].mxu1  ;;  %v430_v55 = vpop.f32.mrb[13].mxu0 }
  0xff   : > { %697 = vst.msk [vmem:[%s1041_s25 + $0x6c] sm:$0xf] %vm669_vm2, %v861_v49  ;;  %679 = vst.msk [vmem:[%s1041_s25 + $0x24] sm:$0xf] %vm669_vm2, %v843_v50  ;;  %v503_v56 = vadd.f32 %v915_v54, %v1029_v18  ;;  %v431_v57 = vadd.f32 %v1029_v18, %v430_v55  ;;  %v494_v58 = vpop.f32.mrb[13].mxu1  ;;  %v900_v59 = vpop.f32.mrb[14].mxu0 }
 0x100   : > { %695 = vst.msk [vmem:[%s1041_s25 + $0x64] sm:$0xf] %vm669_vm2, %v859_v52  ;;  %v523_v60 = vmax.f32 %v439_v53, 0.0  ;;  %v495_v61 = vadd.f32 %v1029_v18, %v494_v58  ;;  %v442_v62 = vadd.f32 %v900_v59, %v1029_v18  ;;  %v916_v63 = vpop.f32.mrb[14].mxu1  ;;  %v433_v0 = vpop.f32.mrb[15].mxu0 }
 0x101   : > { %v539_v1 = vmax.f32 %v503_v56, 0.0  ;;  %v521_v2 = vmax.f32 %v431_v57, 0.0  ;;  %v506_v3 = vadd.f32 %v916_v63, %v1029_v18  ;;  %v434_v4 = vadd.f32 %v1029_v18, %v433_v0  ;;  %v497_v5 = vpop.f32.mrb[15].mxu1 }
 0x102   : > { %v848_v6 = vpack.c.bf16 %v523_v60, %v523_v60  ;;  %v537_v7 = vmax.f32 %v495_v61, 0.0  ;;  %v524_v8 = vmax.f32 %v442_v62, 0.0  ;;  %v498_v9 = vadd.f32 %v1029_v18, %v497_v5 }
 0x103   : > { %v864_v10 = vpack.c.bf16 %v539_v1, %v539_v1  ;;  %v846_v11 = vpack.c.bf16 %v521_v2, %v521_v2  ;;  %v540_v12 = vmax.f32 %v506_v3, 0.0  ;;  %v522_v13 = vmax.f32 %v434_v4, 0.0 }
 0x104   : > { %684 = vst.msk [vmem:[%s1041_s25 + $0x38] sm:$0xf] %vm669_vm2, %v848_v6  ;;  %v862_v14 = vpack.c.bf16 %v537_v7, %v537_v7  ;;  %v849_v15 = vpack.c.bf16 %v524_v8, %v524_v8  ;;  %v538_v16 = vmax.f32 %v498_v9, 0.0 }
 0x105   : > { %700 = vst.msk [vmem:[%s1041_s25 + $0x78] sm:$0xf] %vm669_vm2, %v864_v10  ;;  %682 = vst.msk [vmem:[%s1041_s25 + $0x30] sm:$0xf] %vm669_vm2, %v846_v11  ;;  %v865_v17 = vpack.c.bf16 %v540_v12, %v540_v12  ;;  %v847_v19 = vpack.c.bf16 %v522_v13, %v522_v13 }
 0x106   : > { %698 = vst.msk [vmem:[%s1041_s25 + $0x70] sm:$0xf] %vm669_vm2, %v862_v14  ;;  %685 = vst.msk [vmem:[%s1041_s25 + $0x3c] sm:$0xf] %vm669_vm2, %v849_v15  ;;  %v863_v18 = vpack.c.bf16 %v538_v16, %v538_v16 }
 0x107   : > { %701 = vst.msk [vmem:[%s1041_s25 + $0x7c] sm:$0xf] %vm669_vm2, %v865_v17  ;;  %683 = vst.msk [vmem:[%s1041_s25 + $0x34] sm:$0xf] %vm669_vm2, %v847_v19 }
 0x108   : > { %699 = vst.msk [vmem:[%s1041_s25 + $0x74] sm:$0xf] %vm669_vm2, %v863_v18 }
 0x109 PF: > { %s13_s12 = sadd.s32 1, %s951_s12  }
 0x10a   : > { %p10_p4 = scmp.ge.s32.totalorder %s13_s12, 4  }
 0x10c   :  { %12 = sbr.rel (!%p10_p4) target bundleno = 1 (0x1), region = 62 }

// kernel: bottleneck_pallas.4
= control target key start
LH: loop header
LB: loop body
LE: loop exit
PB: predicated region body
PF: predicated region fallthrough
CT: control target
= control target key end

     0   :  { %s1002_s12 = smov 0   ;;  %s1128_s0 = inlined_call_operand.vmem [shape: bf16[2,18,18,8], index: 0, kind: input, shape index: {}]   ;;  %s1129_s1 = inlined_call_operand.vmem [shape: bf16[9,8,8], index: 1, kind: input, shape index: {}]   ;;  %s1130_s2 = inlined_call_operand.vmem [shape: f32[1,8], index: 2, kind: input, shape index: {}]   ;;  %s1131_s3 = inlined_call_operand.vmem [shape: bf16[2,16,16,8], index: 3, kind: output, shape index: {}]  }
   0x1 LB: > { %s817_s13 = sadd.s32 4294967295, %s974_s12   ;;  %p821_p0 = scmp.ge.s32.totalorder %s974_s12, 1  ;;  %s974_s12 = sphi %s1002_s12, %s13_s12  }
   0x2   : > { %p137_p1 = scmp.lt.s32.totalorder %s974_s12, 3 }
   0x4   : > { %p138_p2 = pnand %p821_p0, %p137_p1 }
   0x5   : > { %p161_p3 = scmp.lt.s32.totalorder (!%p138_p2), %s817_s13, 1  ;;  %v1013_v0 = vld [vmem:[%s1130_s2] ss:$0 sm:$0xff] (!%p138_p2)  ;;  %s1025_s24 = smov (!%p138_p2), 0  }
   0x6   : > { %141 = sbr.rel (%p138_p2) target bundleno = 284 (0x11c), region = 32 }
   0xd   : > { %s1133_s13 = smov (!%p161_p3, %s817_s13), 1 }
   0xe   : > { %s939_s16 = smul.u32 216, %s1133_s13  ;;  %s862_s17 = sshll.u32 %s1133_s13, 7 }
   0xf   : > { %s1018_s20 = scalar_lea.vmem %s1131_s3, %s862_s17 }
  0x10   : > { %s1023_s23 = scalar_lea.vmem %s1128_s0, %s939_s16 }
  0x11 LB: >> { %v826_v1 = vld [vmem:[%s1129_s1 + $0x4] sm:$0xf]  ;;  %vm213_vm0 = vcmask 1043456   ;;  %v185_v2 = vld [vmem:[%s1129_s1] sm:$0xf]  ;;  %v980_v3 = vmov 0.0   ;;  %s978_s24 = sphi %s1025_s24, %s178_s24  }
  0x12   : >> { %885 = vmatprep.subr.bf16.mxu0 %v980_v3  ;;  %v215_v4 = vsel %vm213_vm0, %v826_v1, 0  ;;  %891 = vmatprep.subr.bf16.mxu1 %v980_v3  ;;  %v261_v5 = vsel %vm213_vm0, %v185_v2, 0  ;;  %s863_s29 = smul.u32 12, %s978_s24  ;;  %v836_v6 = vld [vmem:[%s1129_s1 + $0xc] sm:$0xf]  ;;  %vm981_vm1 = vmmov 0  }
  0x13   : >> { %886 = vmatpush3.bf16.msra.mxu0 %v215_v4  ;;  %892 = vmatpush3.bf16.msra.mxu1 %v261_v5  ;;  %vm209_vm2 = vcmask 64512   ;;  %v377_v7 = vsel %vm213_vm0, %v836_v6, 0  ;;  %v831_v15 = vld [vmem:[%s1129_s1 + $0x8] sm:$0xf]  ;;  %vm196_vm3 = vsmask.f32 7424 }
  0x14   : >> { %887 = vmatprep.mubr.msk.bf16.mxu0 %vm981_vm1, %v980_v3  ;;  %893 = vmatprep.mubr.msk.bf16.mxu1 %vm981_vm1, %v980_v3  ;;  %s1050_s5 = scalar_lea.vmem %s1023_s23, %s863_s29  ;;  %v842_v18 = vld [vmem:[%s1129_s1 + $0x14] sm:$0xf]  ;;  %v314_v19 = vsel %vm213_vm0, %v831_v15, 0  ;;  %vm306_vm4 = vcmask 1046528   ;;  %v839_v27 = vld [vmem:[%s1129_s1 + $0x10] sm:$0xf] }
  0x15   : >> { %897 = vmatprep.subr.bf16.mxu0 %v980_v3  ;;  %903 = vmatprep.subr.bf16.mxu1 %v980_v3  ;;  %v958_v8 = vld [vmem:[%s1050_s5] sm:$0xff]   ;;  %v959_v9 = vld [vmem:[%s1050_s5 + $0x8] ss:$0 sps:$4 sm:$0x11]   ;;  %v960_v17 = vld [vmem:[%s1050_s5 + $0xc] sm:$0xff]   ;;  %v496_v22 = vsel %vm213_vm0, %v842_v18, 0 }
  0x16   : >> { %v198_v10 = vshrl.u32 %v958_v8, 16  ;;  %v200_v11 = vshll.u32 %v958_v8, 16  ;;  %v205_v12 = vshll.u32 %v959_v9, 16  ;;  %894 = vmatmul.mubr.msk.bf16.vlgmr.msra.gmra.mrb[0].mxu1 %vm209_vm2, %v958_v8  ;;  %v962_v21 = vld [vmem:[%s1050_s5 + $0x18] sm:$0xff]   ;;  %v307_v23 = vrot.slane %v958_v8, 1  ;;  %s866_s19 = sshll.u32 %s978_s24, 3 }
  0x17   : >> { %904 = vmatpush3.bf16.msra.mxu1 %v377_v7  ;;  %905 = vmatprep.mubr.msk.bf16.mxu1 %vm981_vm1, %v980_v3  ;;  %v308_v24 = vrot.slane %v959_v9, 1  ;;  %v961_v25 = vld [vmem:[%s1050_s5 + $0x14] ss:$0 sps:$4 sm:$0x11]   ;;  %v429_v26 = vshll.u32 %v960_v17, 16  ;;  %v489_v28 = vrot.slane %v960_v17, 1  ;;  %s743_s21 = scalar_lea.vmem %s1018_s20, %s866_s19 }
  0x18   : >> { %v202_v13 = vrot.slane %v200_v11, 1  ;;  %v207_v14 = vrot.slane %v205_v12, 1  ;;  %915 = vmatprep.subr.bf16.mxu1 %v980_v3  ;;  %v490_v29 = vrot.slane %v961_v25, 1  ;;  %v963_v30 = vld [vmem:[%s1050_s5 + $0x20] ss:$0 sps:$4 sm:$0x11]  }
  0x19   : >> { %v611_v31 = vshll.u32 %v962_v21, 16  ;;  %v309_v32 = vsel %vm306_vm4, %v307_v23, %v308_v24  ;;  %v427_v33 = vshrl.u32 %v960_v17, 16  ;;  %v431_v34 = vrot.slane %v429_v26, 1  ;;  %v850_v36 = vld [vmem:[%s1129_s1 + $0x1c] sm:$0xf]  ;;  %s178_s24 = sadd.s32 1, %s978_s24  }
  0x1a   : >> { %v203_v16 = vor.u32 %v202_v13, %v198_v10  ;;  %v434_v35 = vshll.u32 %v961_v25, 16  ;;  %v442_v37 = vsel %vm213_vm0, %v839_v27, 0  ;;  %v491_v38 = vsel %vm306_vm4, %v489_v28, %v490_v29  ;;  %v847_v45 = vld [vmem:[%s1129_s1 + $0x18] sm:$0xf]  ;;  %v853_v51 = vld [vmem:[%s1129_s1 + $0x20] sm:$0xf] }
  0x1b   : >> { %v609_v39 = vshrl.u32 %v962_v21, 16  ;;  %v613_v40 = vrot.slane %v611_v31, 1  ;;  %v616_v41 = vshll.u32 %v963_v30, 16  ;;  %v624_v42 = vsel %vm213_vm0, %v850_v36, 0  ;;  %p175_p4 = scmp.ge.s32.totalorder %s178_s24, 16  }
  0x1c   : >> { %v208_v20 = vsel %vm196_vm3, %v203_v16, %v207_v14  ;;  %v432_v43 = vor.u32 %v431_v34, %v427_v33  ;;  %v436_v44 = vrot.slane %v434_v35, 1  ;;  %v559_v49 = vsel %vm213_vm0, %v847_v45, 0 }
  0x1d   : >> { %888 = vmatmul.mubr.msk.bf16.vlgmr.msra.gmra.mrb[0].mxu0 %vm209_vm2, %v208_v20  ;;  %v614_v46 = vor.u32 %v613_v40, %v609_v39  ;;  %v618_v47 = vrot.slane %v616_v41, 1  ;;  %v678_v52 = vsel %vm213_vm0, %v853_v51, 0  ;;  %v671_v53 = vrot.slane %v962_v21, 1 }
  0x1e   : >> { %898 = vmatpush3.bf16.msra.mxu0 %v314_v19  ;;  %899 = vmatprep.mubr.msk.bf16.mxu0 %vm981_vm1, %v980_v3  ;;  %v437_v48 = vsel %vm196_vm3, %v432_v43, %v436_v44  ;;  %v672_v54 = vrot.slane %v963_v30, 1  ;;  %vm744_vm5 = vcmask 60416  }
  0x1f   : >> { %909 = vmatprep.subr.bf16.mxu0 %v980_v3  ;;  %906 = vmatmul.mubr.msk.bf16.vlgmr.msra.gmra.mrb[4].mxu1 %vm209_vm2, %v960_v17  ;;  %v619_v50 = vsel %vm196_vm3, %v614_v46, %v618_v47 }
  0x20   : >> { %916 = vmatpush3.bf16.msra.mxu1 %v496_v22  ;;  %917 = vmatprep.mubr.msk.bf16.mxu1 %vm981_vm1, %v980_v3  ;;  %v673_v55 = vsel %vm306_vm4, %v671_v53, %v672_v54 }
  0x21   : >> { %927 = vmatprep.subr.bf16.mxu1 %v980_v3 }
  0x25   : >> { %900 = vmatmul.mubr.msk.bf16.vlgmr.msra.gmra.mrb[4].mxu0 %vm209_vm2, %v309_v32 }
  0x26   : >> { %910 = vmatpush3.bf16.msra.mxu0 %v442_v37  ;;  %911 = vmatprep.mubr.msk.bf16.mxu0 %vm981_vm1, %v980_v3 }
  0x27   : >> { %921 = vmatprep.subr.bf16.mxu0 %v980_v3  ;;  %918 = vmatmul.mubr.msk.bf16.vlgmr.msra.gmra.mrb[8].mxu1 %vm209_vm2, %v491_v38 }
  0x28   : >> { %928 = vmatpush3.bf16.msra.mxu1 %v624_v42  ;;  %929 = vmatprep.mubr.msk.bf16.mxu1 %vm981_vm1, %v980_v3 }
  0x2d   : >> { %912 = vmatmul.mubr.msk.bf16.vlgmr.msra.gmra.mrb[8].mxu0 %vm209_vm2, %v437_v48 }
  0x2e   : >> { %922 = vmatpush3.bf16.msra.mxu0 %v559_v49  ;;  %923 = vmatprep.mubr.msk.bf16.mxu0 %vm981_vm1, %v980_v3 }
  0x2f   : >> { %933 = vmatprep.subr.bf16.mxu0 %v980_v3  ;;  %930 = vmatmul.mubr.msk.bf16.vlgmr.msra.gmra.mrb[12].mxu1 %vm209_vm2, %v619_v50 }
  0x35   : >> { %924 = vmatmul.mubr.msk.bf16.vlgmr.msra.gmra.mrb[12].mxu0 %vm209_vm2, %v962_v21 }
  0x36   : >> { %934 = vmatpush3.bf16.msra.mxu0 %v678_v52  ;;  %935 = vmatprep.mubr.msk.bf16.mxu0 %vm981_vm1, %v980_v3 }
  0x3d   : >> { %936 = vmatmul.mubr.msk.bf16.vlgmr.msra.gmra.mrb[16].mxu0 %vm209_vm2, %v673_v55 }
  0xe9   : >> { %v297_v56 = vpop.f32.mrb[0].mxu1 }
  0xea   : >> { %v895_v57 = vpop.f32.mrb[1].mxu1 }
  0xeb   : >> { %v300_v58 = vpop.f32.mrb[2].mxu1 }
  0xec   : >> { %v896_v59 = vpop.f32.mrb[3].mxu1 }
  0xf0   : >> { %v251_v60 = vpop.f32.mrb[0].mxu0 }
  0xf1   : >> { %v298_v61 = vadd.f32 %v297_v56, %v251_v60  ;;  %v889_v62 = vpop.f32.mrb[1].mxu0 }
  0xf2   : >> { %v254_v63 = vpop.f32.mrb[2].mxu0  ;;  %v413_v1 = vpop.f32.mrb[4].mxu1 }
  0xf3   : >> { %v301_v2 = vadd.f32 %v300_v58, %v254_v63  ;;  %v890_v4 = vpop.f32.mrb[3].mxu0  ;;  %v907_v5 = vpop.f32.mrb[5].mxu1 }
  0xf4   : >> { %v416_v6 = vpop.f32.mrb[6].mxu1 }
  0xf5   : >> { %v908_v3 = vpop.f32.mrb[7].mxu1 }
  0xf8   : >> { %v350_v7 = vpop.f32.mrb[4].mxu0 }
  0xf9   : >> { %v357_v8 = vadd.f32 %v350_v7, %v298_v61  ;;  %v901_v9 = vpop.f32.mrb[5].mxu0 }
  0xfa   : >> { %v353_v10 = vpop.f32.mrb[6].mxu0  ;;  %v532_v11 = vpop.f32.mrb[8].mxu1 }
  0xfb   : >> { %v358_v12 = vadd.f32 %v353_v10, %v301_v2  ;;  %v420_v13 = vadd.f32 %v413_v1, %v357_v8  ;;  %v902_v14 = vpop.f32.mrb[7].mxu0  ;;  %v919_v15 = vpop.f32.mrb[9].mxu1 }
  0xfc   : >> { %v535_v16 = vpop.f32.mrb[10].mxu1 }
  0xfd   : >> { %v421_v17 = vadd.f32 %v416_v6, %v358_v12  ;;  %v920_v18 = vpop.f32.mrb[11].mxu1 }
 0x100   : >> { %v478_v19 = vpop.f32.mrb[8].mxu0 }
 0x101   : >> { %v485_v20 = vadd.f32 %v478_v19, %v420_v13  ;;  %v913_v21 = vpop.f32.mrb[9].mxu0 }
 0x102   : >> { %v481_v22 = vpop.f32.mrb[10].mxu0  ;;  %v660_v23 = vpop.f32.mrb[12].mxu1 }
 0x103   : >> { %v486_v24 = vadd.f32 %v481_v22, %v421_v17  ;;  %v539_v25 = vadd.f32 %v532_v11, %v485_v20  ;;  %v914_v26 = vpop.f32.mrb[11].mxu0  ;;  %v931_v27 = vpop.f32.mrb[13].mxu1 }
 0x104   : >> { %v663_v28 = vpop.f32.mrb[14].mxu1 }
 0x105   : >> { %v540_v29 = vadd.f32 %v535_v16, %v486_v24  ;;  %v932_v30 = vpop.f32.mrb[15].mxu1 }
 0x108   : >> { %v595_v31 = vpop.f32.mrb[12].mxu0 }
 0x109   : >> { %v602_v32 = vadd.f32 %v595_v31, %v539_v25  ;;  %v925_v33 = vpop.f32.mrb[13].mxu0 }
 0x10a   : >> { %v598_v34 = vpop.f32.mrb[14].mxu0 }
 0x10b   : >> { %v603_v35 = vadd.f32 %v598_v34, %v540_v29  ;;  %v667_v36 = vadd.f32 %v660_v23, %v602_v32  ;;  %v926_v37 = vpop.f32.mrb[15].mxu0 }
 0x10d   : >> { %v668_v38 = vadd.f32 %v663_v28, %v603_v35 }
 0x110   : >> { %v714_v39 = vpop.f32.mrb[16].mxu0 }
 0x111   : >> { %v721_v40 = vadd.f32 %v714_v39, %v667_v36  ;;  %v937_v41 = vpop.f32.mrb[17].mxu0 }
 0x112   : >> { %v717_v42 = vpop.f32.mrb[18].mxu0 }
 0x113   : >> { %v729_v43 = vadd.f32 %v1013_v0, %v721_v40  ;;  %v722_v44 = vadd.f32 %v717_v42, %v668_v38  ;;  %v938_v45 = vpop.f32.mrb[19].mxu0 }
 0x115   : >> { %v731_v46 = vmax.f32 %v729_v43, 0.0  ;;  %v730_v47 = vadd.f32 %v1013_v0, %v722_v44  ;;  %177 = sbr.rel (!%p175_p4) target bundleno = 17 (0x11), region = 81 }
 0x117   : >> { %v864_v48 = vpack.c.bf16 %v731_v46, %v731_v46  ;;  %v732_v49 = vmax.f32 %v730_v47, 0.0 }
 0x119   : >> { %745 = vst.msk [vmem:[%s743_s21] sm:$0xf] %vm744_vm5, %v864_v48  ;;  %v865_v50 = vpack.c.bf16 %v732_v49, %v732_v49 }
 0x11b   : >> { %746 = vst.msk [vmem:[%s743_s21 + $0x4] sm:$0xf] %vm744_vm5, %v865_v50 }
 0x11c PF: > { %s13_s12 = sadd.s32 1, %s974_s12  }
 0x11d   : > { %p10_p5 = scmp.ge.s32.totalorder %s13_s12, 4  }
 0x11f   :  { %12 = sbr.rel (!%p10_p5) target bundleno = 1 (0x1), region = 92 }

// kernel: bottleneck_pallas.5
= control target key start
LH: loop header
LB: loop body
LE: loop exit
PB: predicated region body
PF: predicated region fallthrough
CT: control target
= control target key end

     0   :  { %11 = vsyncpa [#allocation3], 0  ;;  %s1877_s0 = inlined_call_operand.vmem [shape: bf16[512,8], index: 0, kind: input, shape index: {}]   ;;  %s1878_s1 = inlined_call_operand.vmem [shape: bf16[512,4], index: 1, kind: input, shape index: {}]   ;;  %s1879_s2 = inlined_call_operand.vmem [shape: bf16[8,32], index: 2, kind: input, shape index: {}]   ;;  %s1880_s3 = inlined_call_operand.vmem [shape: f32[1,32], index: 3, kind: input, shape index: {}]   ;;  %s1881_s4 = inlined_call_operand.vmem [shape: bf16[4,32], index: 4, kind: input, shape index: {}]   ;;  %s1882_s5 = inlined_call_operand.vmem [shape: f32[1,32], index: 5, kind: input, shape index: {}]   ;;  %s1883_s6 = inlined_call_operand.hbm [shape: f32[512,32], index: 6, kind: output, shape index: {}]  }
   0x1   :  { %13 = vsyncpa [#allocation3 + $0x1], 0  ;;  %s1553_s21 = smov 0   ;;  %s1555_s22 = smov 0  }
   0x2   :  { %s1557_s23 = smov 0   ;;  %s1559_s24 = smov 0  }
   0x3 LB: > { %s1574_s25 = sadd.s32 4294967295, %s1513_s24   ;;  %s1161_s26 = sadd.s32 4294967294, %s1513_s24   ;;  %s1513_s24 = sphi %s1559_s24, %s1889_s24   ;;  %s1509_s23 = sphi %s1557_s23, %s1888_s23   ;;  %s1505_s22 = sphi %s1555_s22, %s1887_s22   ;;  %s1501_s21 = sphi %s1553_s21, %s1886_s21  }
   0x4   : > { %s1578_s27 = sadd.s32 1, %s1513_s24   ;;  %s162_s28 = sadd.s32 1, %s1509_s23 }
   0x5   : > { %s159_s29 = ssub.s32 %s1513_s24, %s1578_s27  ;;  %p172_p0 = scmp.ne.s32.totalorder %s1509_s23, %s1505_s22 }
   0x6   : > { %p160_p1 = scmp.eq.s32.totalorder %s159_s29, 0  ;;  %p173_p2 = scmp.eq.s32.totalorder %s1574_s25, 1 }
   0x7   : > { %p178_p3 = scmp.ne.s32.totalorder %s1505_s22, %s1501_s21  ;;  %p179_p4 = scmp.eq.s32.totalorder %s1161_s26, 1 }
   0x8   : > { %s1589_s30 = scalar_select %p160_p1, %s1509_s23, %s162_s28  }
   0x9   : > { %p1591_p5 = por %p173_p2, %p172_p0  ;;  %p1595_p6 = por %p179_p4, %p178_p3 }
   0xa   : > { %p1164_p7 = scmp.ge.s32.totalorder %s1513_s24, 1  ;;  %p227_p8 = scmp.lt.s32.totalorder %s1513_s24, 3 }
   0xc   : > { %p228_p9 = pnand %p1164_p7, %p227_p8 }
   0xd   : > { %v341_v0 = vld [vmem:[%s1881_s4] sm:$0x3] (!%p228_p9)  ;;  %vm471_vm0 = vcmask (!%p228_p9), 1041408   ;;  %vm765_vm1 = vcmask (!%p228_p9), 1043456   ;;  %s1166_s13 = sshll.u32 (!%p228_p9), %s1574_s25, 5  ;;  %vm422_vm2 = vcmask (!%p228_p9), 31744  }
   0xe   : > { %231 = sbr.rel (%p228_p9) target bundleno = 321 (0x141), region = 44  ;;  %v308_v1 = vld [vmem:[%s1879_s2] sm:$0xf] (!%p228_p9)  ;;  %1376 = vmatprep.subr.msk.bf16.mxu1 (!%p228_p9), %vm471_vm0, %v341_v0  ;;  %v473_v2 = vsel (!%p228_p9), %vm471_vm0, %v341_v0, 0  ;;  %p263_p10 = scmp.lt.s32.totalorder (!%p228_p9), %s1166_s13, 63  ;;  %vm716_vm3 = vcmask (!%p228_p9), 64512  }
   0xf   : > { %1377 = vmatprep.subr.msk.bf16.mxu0 (!%p228_p9), %vm765_vm1, %v308_v1  ;;  %v767_v3 = vsel (!%p228_p9), %vm765_vm1, %v308_v1, 0  ;;  %1277 = vmatpush3.bf16.msra.mxu1 (!%p228_p9), %v473_v2  ;;  %s259_s26 = sand.u32 (!%p228_p9), 1, %s1505_s22   ;;  %v1686_v38 = vld [vmem:[%s1880_s3] ss:$0 sm:$0xff] (!%p228_p9)  ;;  %vm1040_vm4 = vcmask (!%p228_p9), 261120   ;;  %s1515_s19 = smov (!%p228_p9), [#allocation2]  }
  0x10   : > { %1311 = vmatpush3.bf16.msra.mxu0 (!%p228_p9), %v767_v3  ;;  %v1691_v43 = vld [vmem:[%s1882_s5] ss:$0 sm:$0xff] (!%p228_p9)  ;;  %s1165_s11 = sshll.u32 (!%p228_p9), %s259_s26, 8 }
  0x11   : > { %s1703_s12 = scalar_lea.vmem (!%p228_p9), [#allocation2], %s1165_s11 }
  0x15   : > { %s1891_s13 = smov (!%p263_p10, %s1166_s13), 63 }
  0x16   : > { %s1167_s14 = sshll.u32 %s1891_s13, 2  ;;  %s1241_s13 = sshll.u32 %s1574_s25, 12 }
  0x17   : > { %s1611_s17 = scalar_lea.vmem %s1878_s1, %s1167_s14  ;;  %s1616_s20 = scalar_lea.vmem %s1877_s0, %s1167_s14 }
  0x18   : > { %v1419_v4 = vld [vmem:[%s1611_s17] sm:$0xff]   ;;  %v1421_v6 = vld [vmem:[%s1611_s17 + $0x8] sm:$0xff]   ;;  %v1423_v8 = vld [vmem:[%s1611_s17 + $0x10] sm:$0xff]   ;;  %s1087_s14 = sshll.u32 %s1703_s12, 4  ;;  %s1836_s25 = scalar_lea.sflag [#allocation3], %s259_s26  ;;  %s1826_s14 = int_to_ptr.vmem [resolvable:$true] %s1087_s14 }
  0x19   : > { %v1420_v5 = vld [vmem:[%s1616_s20] sm:$0xff]   ;;  %1278 = vmatprep.mubr.msk.bf16.mxu1 %vm422_vm2, %v1419_v4  ;;  %v1422_v7 = vld [vmem:[%s1616_s20 + $0x8] sm:$0xff]   ;;  %v1424_v9 = vld [vmem:[%s1616_s20 + $0x10] sm:$0xff]   ;;  %s1451_s18 = scalar_lea.vmem %s1826_s14, 4096 }
  0x1a   : > { %1312 = vmatprep.mubr.msk.bf16.mxu0 %vm716_vm3, %v1420_v5  ;;  %1279 = vmatmul.mubr.msk.bf16.vlgmr.msra.gmra.mrb[0].mxu1 %vm422_vm2, %v1421_v6  ;;  %v1425_v10 = vld [vmem:[%s1611_s17 + $0x18] sm:$0xff]   ;;  %v1427_v12 = vld [vmem:[%s1611_s17 + $0x20] sm:$0xff]   ;;  %v1429_v14 = vld [vmem:[%s1611_s17 + $0x28] sm:$0xff]   ;;  %p1452_p11 = scmp.ne.s32.totalorder %s1826_s14, %s1451_s18 }
  0x1b   : > { %1313 = vmatmul.mubr.msk.bf16.vlgmr.msra.gmra.mrb[0].mxu0 %vm716_vm3, %v1422_v7  ;;  %1282 = vmatprep.mubr.msk.bf16.mxu1 %vm422_vm2, %v1423_v8  ;;  %v1426_v11 = vld [vmem:[%s1616_s20 + $0x18] sm:$0xff]   ;;  %v1428_v13 = vld [vmem:[%s1616_s20 + $0x20] sm:$0xff]   ;;  %v1430_v15 = vld [vmem:[%s1616_s20 + $0x28] sm:$0xff]  }
  0x1c   : > { %1316 = vmatprep.mubr.msk.bf16.mxu0 %vm716_vm3, %v1424_v9  ;;  %v1431_v16 = vld [vmem:[%s1611_s17 + $0x30] sm:$0xff]   ;;  %v1433_v18 = vld [vmem:[%s1611_s17 + $0x38] sm:$0xff]   ;;  %v1435_v20 = vld [vmem:[%s1611_s17 + $0x40] sm:$0xff]   ;;  %p1453_p12 = pnand %p1452_p11, %p1591_p5 }
  0x1d   : > { %v1432_v17 = vld [vmem:[%s1616_s20 + $0x30] sm:$0xff]   ;;  %v1434_v19 = vld [vmem:[%s1616_s20 + $0x38] sm:$0xff]   ;;  %v1436_v21 = vld [vmem:[%s1616_s20 + $0x40] sm:$0xff]  }
  0x1e   : > { %v1437_v22 = vld [vmem:[%s1611_s17 + $0x48] sm:$0xff]   ;;  %v1439_v24 = vld [vmem:[%s1611_s17 + $0x50] sm:$0xff]   ;;  %v1441_v26 = vld [vmem:[%s1611_s17 + $0x58] sm:$0xff]   ;;  %p1454_p13 = pneg %p1453_p12 }
  0x1f   : > { %v1438_v23 = vld [vmem:[%s1616_s20 + $0x48] sm:$0xff]   ;;  %v1440_v25 = vld [vmem:[%s1616_s20 + $0x50] sm:$0xff]   ;;  %v1442_v27 = vld [vmem:[%s1616_s20 + $0x58] sm:$0xff]  }
  0x20   : > { %v1443_v28 = vld [vmem:[%s1611_s17 + $0x60] sm:$0xff]   ;;  %v1445_v30 = vld [vmem:[%s1611_s17 + $0x68] sm:$0xff]   ;;  %v1447_v32 = vld [vmem:[%s1611_s17 + $0x70] sm:$0xff]  }
  0x21   : > { %v1444_v29 = vld [vmem:[%s1616_s20 + $0x60] sm:$0xff]   ;;  %v1446_v31 = vld [vmem:[%s1616_s20 + $0x68] sm:$0xff]   ;;  %v1448_v33 = vld [vmem:[%s1616_s20 + $0x70] sm:$0xff]  }
  0x22   : > { %1283 = vmatmul.mubr.msk.bf16.gmra.mrb[4].mxu1 %vm422_vm2, %v1425_v10  ;;  %v1449_v34 = vld [vmem:[%s1611_s17 + $0x78] sm:$0xff]   ;;  %s1824_s17 = scalar_lea.hbm %s1883_s6, %s1241_s13 }
  0x23   : > { %1317 = vmatmul.mubr.msk.bf16.gmra.mrb[4].mxu0 %vm716_vm3, %v1426_v11  ;;  %1286 = vmatprep.mubr.msk.bf16.mxu1 %vm422_vm2, %v1427_v12  ;;  %v1450_v35 = vld [vmem:[%s1616_s20 + $0x78] sm:$0xff]   ;;  %s1455_s20 = sshll.u32 %s1515_s19, 4  ;;  %s1456_s20 = int_to_ptr.vmem [resolvable:$false] %s1455_s20 }
  0x24   : > { %1320 = vmatprep.mubr.msk.bf16.mxu0 %vm716_vm3, %v1428_v13  ;;  %s1457_s28 = scalar_lea.vmem %s1456_s20, 8192  ;;  %p1458_p0 = scmp.lt.s32.totalorder %s1826_s14, %s1456_s20 }
  0x25   : > { %p1459_p1 = scmp.lt.s32.totalorder %s1457_s28, %s1451_s18 }
  0x27   : > { %p1460_p2 = por %p1459_p1, %p1458_p0 }
  0x29   : > { %p1461_p3 = pnand %p1460_p2, %p1454_p13 }
  0x2a   : > { %1287 = vmatmul.mubr.msk.bf16.gmra.mrb[8].mxu1 %vm422_vm2, %v1429_v14 }
  0x2b   : > { %1321 = vmatmul.mubr.msk.bf16.gmra.mrb[8].mxu0 %vm716_vm3, %v1430_v15  ;;  %1290 = vmatprep.mubr.msk.bf16.mxu1 %vm422_vm2, %v1431_v16 }
  0x2c   : > { %1324 = vmatprep.mubr.msk.bf16.mxu0 %vm716_vm3, %v1432_v17 }
  0x32   : > { %1291 = vmatmul.mubr.msk.bf16.gmra.mrb[12].mxu1 %vm422_vm2, %v1433_v18 }
  0x33   : > { %1325 = vmatmul.mubr.msk.bf16.gmra.mrb[12].mxu0 %vm716_vm3, %v1434_v19  ;;  %1294 = vmatprep.mubr.msk.bf16.mxu1 %vm422_vm2, %v1435_v20 }
  0x34   : > { %1328 = vmatprep.mubr.msk.bf16.mxu0 %vm716_vm3, %v1436_v21 }
  0x3a   : > { %1295 = vmatmul.mubr.msk.bf16.gmra.mrb[16].mxu1 %vm422_vm2, %v1437_v22 }
  0x3b   : > { %1329 = vmatmul.mubr.msk.bf16.gmra.mrb[16].mxu0 %vm716_vm3, %v1438_v23  ;;  %1298 = vmatprep.mubr.msk.bf16.mxu1 %vm422_vm2, %v1439_v24 }
  0x3c   : > { %1332 = vmatprep.mubr.msk.bf16.mxu0 %vm716_vm3, %v1440_v25 }
  0x42   : > { %1299 = vmatmul.mubr.msk.bf16.gmra.mrb[20].mxu1 %vm422_vm2, %v1441_v26 }
  0x43   : > { %1333 = vmatmul.mubr.msk.bf16.gmra.mrb[20].mxu0 %vm716_vm3, %v1442_v27  ;;  %1302 = vmatprep.mubr.msk.bf16.mxu1 %vm422_vm2, %v1443_v28 }
  0x44   : > { %1336 = vmatprep.mubr.msk.bf16.mxu0 %vm716_vm3, %v1444_v29 }
  0x4a   : > { %1303 = vmatmul.mubr.msk.bf16.gmra.mrb[24].mxu1 %vm422_vm2, %v1445_v30 }
  0x4b   : > { %1337 = vmatmul.mubr.msk.bf16.gmra.mrb[24].mxu0 %vm716_vm3, %v1446_v31  ;;  %1306 = vmatprep.mubr.msk.bf16.mxu1 %vm422_vm2, %v1447_v32 }
  0x4c   : > { %1340 = vmatprep.mubr.msk.bf16.mxu0 %vm716_vm3, %v1448_v33 }
  0x52   : > { %1307 = vmatmul.mubr.msk.bf16.gmra.mrb[28].mxu1 %vm422_vm2, %v1449_v34 }
  0x53   : > { %1341 = vmatmul.mubr.msk.bf16.gmra.mrb[28].mxu0 %vm716_vm3, %v1450_v35 }
  0xed   : > { %v1280_v36 = vpop.f32.mrb[0].mxu1 }
  0xee   : > { %v1314_v37 = vpop.f32.mrb[0].mxu0  ;;  %v509_v39 = vpop.f32.mrb[1].mxu1 }
  0xef   : > { %v812_v40 = vadd.f32 %v1314_v37, %v1280_v36  ;;  %v803_v41 = vpop.f32.mrb[1].mxu0  ;;  %v1281_v42 = vpop.f32.mrb[2].mxu1 }
  0xf0   : > { %v804_v44 = vadd.f32 %v803_v41, %v509_v39  ;;  %v1315_v45 = vpop.f32.mrb[2].mxu0  ;;  %v512_v46 = vpop.f32.mrb[3].mxu1 }
  0xf1   : > { %v939_v47 = vadd.f32 %v1686_v38, %v812_v40  ;;  %v815_v48 = vadd.f32 %v1315_v45, %v1281_v42  ;;  %v806_v49 = vpop.f32.mrb[3].mxu0 }
  0xf2   : > { %v937_v50 = vadd.f32 %v1686_v38, %v804_v44  ;;  %v807_v51 = vadd.f32 %v806_v49, %v512_v46 }
  0xf3   : > { %v978_v52 = vadd.f32 %v1691_v43, %v939_v47  ;;  %v940_v53 = vadd.f32 %v1686_v38, %v815_v48 }
  0xf4   : > { %v976_v54 = vadd.f32 %v1691_v43, %v937_v50  ;;  %v938_v55 = vadd.f32 %v1686_v38, %v807_v51 }
  0xf5   : > { %v1010_v56 = vmax.f32 %v978_v52, 0.0  ;;  %v979_v57 = vadd.f32 %v1691_v43, %v940_v53  ;;  %v1284_v58 = vpop.f32.mrb[4].mxu1 }
  0xf6   : > { %v1008_v59 = vmax.f32 %v976_v54, 0.0  ;;  %v977_v60 = vadd.f32 %v1691_v43, %v938_v55  ;;  %v1318_v61 = vpop.f32.mrb[4].mxu0  ;;  %v525_v62 = vpop.f32.mrb[5].mxu1 }
  0xf7   : > { %1043 = vst.msk [vmem:[%s1703_s12 + $0x10] sm:$0xff] %vm1040_vm4, %v1010_v56  ;;  %v1011_v63 = vmax.f32 %v979_v57, 0.0  ;;  %v828_v0 = vadd.f32 %v1318_v61, %v1284_v58  ;;  %v819_v1 = vpop.f32.mrb[5].mxu0  ;;  %v1285_v2 = vpop.f32.mrb[6].mxu1 }
  0xf8   : > { %1041 = vst.msk [vmem:[%s1703_s12] sm:$0xff] %vm1040_vm4, %v1008_v59  ;;  %v1009_v3 = vmax.f32 %v977_v60, 0.0  ;;  %v820_v4 = vadd.f32 %v819_v1, %v525_v62  ;;  %v1319_v5 = vpop.f32.mrb[6].mxu0  ;;  %v528_v6 = vpop.f32.mrb[7].mxu1 }
  0xf9   : > { %1044 = vst.msk [vmem:[%s1703_s12 + $0x18] sm:$0xff] %vm1040_vm4, %v1011_v63  ;;  %v943_v7 = vadd.f32 %v1686_v38, %v828_v0  ;;  %v831_v8 = vadd.f32 %v1319_v5, %v1285_v2  ;;  %v822_v9 = vpop.f32.mrb[7].mxu0 }
  0xfa   : > { %1042 = vst.msk [vmem:[%s1703_s12 + $0x8] sm:$0xff] %vm1040_vm4, %v1009_v3  ;;  %v941_v10 = vadd.f32 %v1686_v38, %v820_v4  ;;  %v823_v11 = vadd.f32 %v822_v9, %v528_v6 }
  0xfb   : > { %v982_v12 = vadd.f32 %v1691_v43, %v943_v7  ;;  %v944_v13 = vadd.f32 %v1686_v38, %v831_v8 }
  0xfc   : > { %v980_v14 = vadd.f32 %v1691_v43, %v941_v10  ;;  %v942_v15 = vadd.f32 %v1686_v38, %v823_v11 }
  0xfd   : > { %v1014_v16 = vmax.f32 %v982_v12, 0.0  ;;  %v983_v17 = vadd.f32 %v1691_v43, %v944_v13  ;;  %v1288_v18 = vpop.f32.mrb[8].mxu1 }
  0xfe   : > { %v1012_v19 = vmax.f32 %v980_v14, 0.0  ;;  %v981_v20 = vadd.f32 %v1691_v43, %v942_v15  ;;  %v1322_v21 = vpop.f32.mrb[8].mxu0  ;;  %v541_v22 = vpop.f32.mrb[9].mxu1 }
  0xff   : > { %1047 = vst.msk [vmem:[%s1703_s12 + $0x30] sm:$0xff] %vm1040_vm4, %v1014_v16  ;;  %v1015_v23 = vmax.f32 %v983_v17, 0.0  ;;  %v844_v24 = vadd.f32 %v1322_v21, %v1288_v18  ;;  %v835_v25 = vpop.f32.mrb[9].mxu0  ;;  %v1289_v26 = vpop.f32.mrb[10].mxu1 }
 0x100   : > { %1045 = vst.msk [vmem:[%s1703_s12 + $0x20] sm:$0xff] %vm1040_vm4, %v1012_v19  ;;  %v1013_v27 = vmax.f32 %v981_v20, 0.0  ;;  %v836_v28 = vadd.f32 %v835_v25, %v541_v22  ;;  %v1323_v29 = vpop.f32.mrb[10].mxu0  ;;  %v544_v30 = vpop.f32.mrb[11].mxu1 }
 0x101   : > { %1048 = vst.msk [vmem:[%s1703_s12 + $0x38] sm:$0xff] %vm1040_vm4, %v1015_v23  ;;  %v947_v31 = vadd.f32 %v1686_v38, %v844_v24  ;;  %v847_v32 = vadd.f32 %v1323_v29, %v1289_v26  ;;  %v838_v33 = vpop.f32.mrb[11].mxu0 }
 0x102   : > { %1046 = vst.msk [vmem:[%s1703_s12 + $0x28] sm:$0xff] %vm1040_vm4, %v1013_v27  ;;  %v945_v34 = vadd.f32 %v1686_v38, %v836_v28  ;;  %v839_v35 = vadd.f32 %v838_v33, %v544_v30 }
 0x103   : > { %v986_v36 = vadd.f32 %v1691_v43, %v947_v31  ;;  %v948_v37 = vadd.f32 %v1686_v38, %v847_v32 }
 0x104   : > { %v984_v39 = vadd.f32 %v1691_v43, %v945_v34  ;;  %v946_v40 = vadd.f32 %v1686_v38, %v839_v35 }
 0x105   : > { %v1018_v41 = vmax.f32 %v986_v36, 0.0  ;;  %v987_v42 = vadd.f32 %v1691_v43, %v948_v37  ;;  %v1292_v44 = vpop.f32.mrb[12].mxu1 }
 0x106   : > { %v1016_v45 = vmax.f32 %v984_v39, 0.0  ;;  %v985_v46 = vadd.f32 %v1691_v43, %v946_v40  ;;  %v1326_v47 = vpop.f32.mrb[12].mxu0  ;;  %v557_v48 = vpop.f32.mrb[13].mxu1 }
 0x107   : > { %1051 = vst.msk [vmem:[%s1703_s12 + $0x50] sm:$0xff] %vm1040_vm4, %v1018_v41  ;;  %v1019_v49 = vmax.f32 %v987_v42, 0.0  ;;  %v860_v50 = vadd.f32 %v1326_v47, %v1292_v44  ;;  %v851_v51 = vpop.f32.mrb[13].mxu0  ;;  %v1293_v52 = vpop.f32.mrb[14].mxu1 }
 0x108   : > { %1049 = vst.msk [vmem:[%s1703_s12 + $0x40] sm:$0xff] %vm1040_vm4, %v1016_v45  ;;  %v1017_v53 = vmax.f32 %v985_v46, 0.0  ;;  %v852_v54 = vadd.f32 %v851_v51, %v557_v48  ;;  %v1327_v55 = vpop.f32.mrb[14].mxu0  ;;  %v560_v56 = vpop.f32.mrb[15].mxu1 }
 0x109   : > { %1052 = vst.msk [vmem:[%s1703_s12 + $0x58] sm:$0xff] %vm1040_vm4, %v1019_v49  ;;  %v951_v57 = vadd.f32 %v1686_v38, %v860_v50  ;;  %v863_v58 = vadd.f32 %v1327_v55, %v1293_v52  ;;  %v854_v59 = vpop.f32.mrb[15].mxu0 }
 0x10a   : > { %1050 = vst.msk [vmem:[%s1703_s12 + $0x48] sm:$0xff] %vm1040_vm4, %v1017_v53  ;;  %v949_v60 = vadd.f32 %v1686_v38, %v852_v54  ;;  %v855_v61 = vadd.f32 %v854_v59, %v560_v56 }
 0x10b   : > { %v990_v62 = vadd.f32 %v1691_v43, %v951_v57  ;;  %v952_v63 = vadd.f32 %v1686_v38, %v863_v58 }
 0x10c   : > { %v988_v0 = vadd.f32 %v1691_v43, %v949_v60  ;;  %v950_v1 = vadd.f32 %v1686_v38, %v855_v61 }
 0x10d   : > { %v1022_v2 = vmax.f32 %v990_v62, 0.0  ;;  %v991_v3 = vadd.f32 %v1691_v43, %v952_v63  ;;  %v1296_v4 = vpop.f32.mrb[16].mxu1 }
 0x10e   : > { %v1020_v5 = vmax.f32 %v988_v0, 0.0  ;;  %v989_v6 = vadd.f32 %v1691_v43, %v950_v1  ;;  %v1330_v7 = vpop.f32.mrb[16].mxu0  ;;  %v573_v8 = vpop.f32.mrb[17].mxu1 }
 0x10f   : > { %1055 = vst.msk [vmem:[%s1703_s12 + $0x70] sm:$0xff] %vm1040_vm4, %v1022_v2  ;;  %v1023_v9 = vmax.f32 %v991_v3, 0.0  ;;  %v876_v10 = vadd.f32 %v1330_v7, %v1296_v4  ;;  %v867_v11 = vpop.f32.mrb[17].mxu0  ;;  %v1297_v12 = vpop.f32.mrb[18].mxu1 }
 0x110   : > { %1053 = vst.msk [vmem:[%s1703_s12 + $0x60] sm:$0xff] %vm1040_vm4, %v1020_v5  ;;  %v1021_v13 = vmax.f32 %v989_v6, 0.0  ;;  %v868_v14 = vadd.f32 %v867_v11, %v573_v8  ;;  %v1331_v15 = vpop.f32.mrb[18].mxu0  ;;  %v576_v16 = vpop.f32.mrb[19].mxu1 }
 0x111   : > { %1056 = vst.msk [vmem:[%s1703_s12 + $0x78] sm:$0xff] %vm1040_vm4, %v1023_v9  ;;  %v955_v17 = vadd.f32 %v1686_v38, %v876_v10  ;;  %v879_v18 = vadd.f32 %v1331_v15, %v1297_v12  ;;  %v870_v19 = vpop.f32.mrb[19].mxu0 }
 0x112   : > { %1054 = vst.msk [vmem:[%s1703_s12 + $0x68] sm:$0xff] %vm1040_vm4, %v1021_v13  ;;  %v953_v20 = vadd.f32 %v1686_v38, %v868_v14  ;;  %v871_v21 = vadd.f32 %v870_v19, %v576_v16 }
 0x113   : > { %v994_v22 = vadd.f32 %v1691_v43, %v955_v17  ;;  %v956_v23 = vadd.f32 %v1686_v38, %v879_v18 }
 0x114   : > { %v992_v24 = vadd.f32 %v1691_v43, %v953_v20  ;;  %v954_v25 = vadd.f32 %v1686_v38, %v871_v21 }
 0x115   : > { %v1026_v26 = vmax.f32 %v994_v22, 0.0  ;;  %v995_v27 = vadd.f32 %v1691_v43, %v956_v23  ;;  %v1300_v28 = vpop.f32.mrb[20].mxu1 }
 0x116   : > { %v1024_v29 = vmax.f32 %v992_v24, 0.0  ;;  %v993_v30 = vadd.f32 %v1691_v43, %v954_v25  ;;  %v1334_v31 = vpop.f32.mrb[20].mxu0  ;;  %v589_v32 = vpop.f32.mrb[21].mxu1 }
 0x117   : > { %1059 = vst.msk [vmem:[%s1703_s12 + $0x90] sm:$0xff] %vm1040_vm4, %v1026_v26  ;;  %v1027_v33 = vmax.f32 %v995_v27, 0.0  ;;  %v892_v34 = vadd.f32 %v1334_v31, %v1300_v28  ;;  %v883_v35 = vpop.f32.mrb[21].mxu0  ;;  %v1301_v36 = vpop.f32.mrb[22].mxu1 }
 0x118   : > { %1057 = vst.msk [vmem:[%s1703_s12 + $0x80] sm:$0xff] %vm1040_vm4, %v1024_v29  ;;  %v1025_v37 = vmax.f32 %v993_v30, 0.0  ;;  %v884_v39 = vadd.f32 %v883_v35, %v589_v32  ;;  %v1335_v40 = vpop.f32.mrb[22].mxu0  ;;  %v592_v41 = vpop.f32.mrb[23].mxu1 }
 0x119   : > { %1060 = vst.msk [vmem:[%s1703_s12 + $0x98] sm:$0xff] %vm1040_vm4, %v1027_v33  ;;  %v959_v42 = vadd.f32 %v1686_v38, %v892_v34  ;;  %v895_v44 = vadd.f32 %v1335_v40, %v1301_v36  ;;  %v886_v45 = vpop.f32.mrb[23].mxu0 }
 0x11a   : > { %1058 = vst.msk [vmem:[%s1703_s12 + $0x88] sm:$0xff] %vm1040_vm4, %v1025_v37  ;;  %v957_v46 = vadd.f32 %v1686_v38, %v884_v39  ;;  %v887_v47 = vadd.f32 %v886_v45, %v592_v41 }
 0x11b   : > { %v998_v48 = vadd.f32 %v1691_v43, %v959_v42  ;;  %v960_v49 = vadd.f32 %v1686_v38, %v895_v44 }
 0x11c   : > { %v996_v50 = vadd.f32 %v1691_v43, %v957_v46  ;;  %v958_v51 = vadd.f32 %v1686_v38, %v887_v47 }
 0x11d   : > { %v1030_v52 = vmax.f32 %v998_v48, 0.0  ;;  %v999_v53 = vadd.f32 %v1691_v43, %v960_v49  ;;  %v1304_v54 = vpop.f32.mrb[24].mxu1 }
 0x11e   : > { %v1028_v55 = vmax.f32 %v996_v50, 0.0  ;;  %v997_v56 = vadd.f32 %v1691_v43, %v958_v51  ;;  %v1338_v57 = vpop.f32.mrb[24].mxu0  ;;  %v605_v58 = vpop.f32.mrb[25].mxu1 }
 0x11f   : > { %1063 = vst.msk [vmem:[%s1703_s12 + $0xb0] sm:$0xff] %vm1040_vm4, %v1030_v52  ;;  %v1031_v59 = vmax.f32 %v999_v53, 0.0  ;;  %v908_v60 = vadd.f32 %v1338_v57, %v1304_v54  ;;  %v899_v61 = vpop.f32.mrb[25].mxu0  ;;  %v1305_v62 = vpop.f32.mrb[26].mxu1 }
 0x120   : > { %1061 = vst.msk [vmem:[%s1703_s12 + $0xa0] sm:$0xff] %vm1040_vm4, %v1028_v55  ;;  %v1029_v63 = vmax.f32 %v997_v56, 0.0  ;;  %v900_v0 = vadd.f32 %v899_v61, %v605_v58  ;;  %v1339_v1 = vpop.f32.mrb[26].mxu0  ;;  %v608_v2 = vpop.f32.mrb[27].mxu1 }
 0x121   : > { %1064 = vst.msk [vmem:[%s1703_s12 + $0xb8] sm:$0xff] %vm1040_vm4, %v1031_v59  ;;  %v963_v3 = vadd.f32 %v1686_v38, %v908_v60  ;;  %v911_v4 = vadd.f32 %v1339_v1, %v1305_v62  ;;  %v902_v5 = vpop.f32.mrb[27].mxu0 }
 0x122   : > { %1062 = vst.msk [vmem:[%s1703_s12 + $0xa8] sm:$0xff] %vm1040_vm4, %v1029_v63  ;;  %v961_v6 = vadd.f32 %v1686_v38, %v900_v0  ;;  %v903_v7 = vadd.f32 %v902_v5, %v608_v2 }
 0x123   : > { %v1002_v8 = vadd.f32 %v1691_v43, %v963_v3  ;;  %v964_v9 = vadd.f32 %v1686_v38, %v911_v4 }
 0x124   : > { %v1000_v10 = vadd.f32 %v1691_v43, %v961_v6  ;;  %v962_v11 = vadd.f32 %v1686_v38, %v903_v7 }
 0x125   : > { %v1034_v12 = vmax.f32 %v1002_v8, 0.0  ;;  %v1003_v13 = vadd.f32 %v1691_v43, %v964_v9  ;;  %v1308_v14 = vpop.f32.mrb[28].mxu1 }
 0x126   : > { %v1032_v15 = vmax.f32 %v1000_v10, 0.0  ;;  %v1001_v16 = vadd.f32 %v1691_v43, %v962_v11  ;;  %v1342_v17 = vpop.f32.mrb[28].mxu0  ;;  %v621_v18 = vpop.f32.mrb[29].mxu1 }
 0x127   : > { %1067 = vst.msk [vmem:[%s1703_s12 + $0xd0] sm:$0xff] %vm1040_vm4, %v1034_v12  ;;  %v1035_v19 = vmax.f32 %v1003_v13, 0.0  ;;  %v924_v20 = vadd.f32 %v1342_v17, %v1308_v14  ;;  %v915_v21 = vpop.f32.mrb[29].mxu0  ;;  %v1309_v22 = vpop.f32.mrb[30].mxu1 }
 0x128   : > { %1065 = vst.msk [vmem:[%s1703_s12 + $0xc0] sm:$0xff] %vm1040_vm4, %v1032_v15  ;;  %v1033_v23 = vmax.f32 %v1001_v16, 0.0  ;;  %v916_v24 = vadd.f32 %v915_v21, %v621_v18  ;;  %v1343_v25 = vpop.f32.mrb[30].mxu0  ;;  %v624_v26 = vpop.f32.mrb[31].mxu1 }
 0x129   : > { %1068 = vst.msk [vmem:[%s1703_s12 + $0xd8] sm:$0xff] %vm1040_vm4, %v1035_v19  ;;  %v967_v27 = vadd.f32 %v1686_v38, %v924_v20  ;;  %v927_v28 = vadd.f32 %v1343_v25, %v1309_v22  ;;  %v918_v29 = vpop.f32.mrb[31].mxu0 }
 0x12a   : > { %1066 = vst.msk [vmem:[%s1703_s12 + $0xc8] sm:$0xff] %vm1040_vm4, %v1033_v23  ;;  %v965_v30 = vadd.f32 %v1686_v38, %v916_v24  ;;  %v919_v31 = vadd.f32 %v918_v29, %v624_v26 }
 0x12b   : > { %v1006_v32 = vadd.f32 %v1691_v43, %v967_v27  ;;  %v968_v33 = vadd.f32 %v1686_v38, %v927_v28 }
 0x12c   : > { %v1004_v34 = vadd.f32 %v1691_v43, %v965_v30  ;;  %v966_v35 = vadd.f32 %v1686_v38, %v919_v31 }
 0x12d   : > { %v1038_v36 = vmax.f32 %v1006_v32, 0.0  ;;  %v1007_v37 = vadd.f32 %v1691_v43, %v968_v33 }
 0x12e   : > { %v1036_v39 = vmax.f32 %v1004_v34, 0.0  ;;  %v1005_v40 = vadd.f32 %v1691_v43, %v966_v35 }
 0x12f   : > { %1071 = vst.msk [vmem:[%s1703_s12 + $0xf0] sm:$0xff] %vm1040_vm4, %v1038_v36  ;;  %v1039_v41 = vmax.f32 %v1007_v37, 0.0 }
 0x130   : > { %1069 = vst.msk [vmem:[%s1703_s12 + $0xe0] sm:$0xff] %vm1040_vm4, %v1036_v39  ;;  %v1037_v38 = vmax.f32 %v1005_v40, 0.0 }
 0x131   : > { %1072 = vst.msk [vmem:[%s1703_s12 + $0xf8] sm:$0xff] %vm1040_vm4, %v1039_v41 }
 0x132   : > { %1070 = vst.msk [vmem:[%s1703_s12 + $0xe8] sm:$0xff] %vm1040_vm4, %v1037_v38 }
 0x133   : > { %1464 = shalt.err (!%p1461_p3)
}
 0x134   : > { %s1465_s26 = scalar_lea.hbm %s1824_s17, 4096  ;;  %s1469_s10 = scalar_lea.hbm %s1883_s6, 8192 }
 0x135   : > { %p1466_p4 = scmp.ne.s32.totalorder %s1824_s17, %s1465_s26  ;;  %p1470_p9 = scmp.lt.u32.totalorder %s1824_s17, %s1883_s6 }
 0x136   : > { %p1471_p10 = scmp.lt.u32.totalorder %s1469_s10, %s1465_s26  ;;  %p1473_p12 = scmp.lt.u32.totalorder %s1465_s26, %s1824_s17 }
 0x137   : > { %p1467_p7 = pnand %p1466_p4, %p1591_p5 }
 0x138   : > { %p1472_p11 = por %p1471_p10, %p1470_p9 }
 0x139   : > { %p1468_p8 = pneg %p1467_p7 }
 0x13a   : > { %p1474_p13 = por %p1473_p12, %p1472_p11 }
 0x13c   : > { %p1475_p0 = pnand %p1474_p13, %p1468_p8 }
 0x13e   : > { %1478 = shalt.err (!%p1475_p0)
}
 0x13f   : > { %s1516_s13 = smov 128   ;;  %s1517_s15 = smov 8  }
 0x140   : > { %1378 = dma.vmem_to_hbm [thread:$0]  (%p1591_p5), %s1826_s14, 4096, %s1824_s17, %s1836_s25, %s1516_s13, %s1516_s13, %s1517_s15  }
 0x141 PF: > { %p1384_p1 = scmp.ge.s32.totalorder %s1513_s24, 2  ;;  %s1102_s16 = sand.u32 1, %s1501_s21  }
 0x142   : > { %s1103_s18 = scalar_lea.sflag [#allocation3], %s1102_s16 }
 0x143   : > { %p1381_p2 = pnand %p1384_p1, %p1595_p6 }
 0x145   : > { %1496 = dma.done.wait (!%p1381_p2), %s1103_s18, 4096  }
 0x146   : > { %1498 = vsyncadd (!%p1381_p2), %s1103_s18, 4294963200  ;;  %p16_p3 = scmp.ge.s32.totalorder %s1578_s27, 4   ;;  %s1886_s21 = smov %s1505_s22 }
 0x147   : > { %s1887_s22 = smov %s1509_s23  ;;  %s1888_s23 = smov %s1589_s30 }
 0x148   : > { %s1889_s24 = smov %s1578_s27  ;;  %18 = sbr.rel (!%p16_p3) target bundleno = 3 (0x3), region = 82 }
 0x14f   :  { %1108 = vsyncpa [#allocation3], 1 }
 0x150   :  { %1110 = vsyncpa [#allocation3 + $0x1], 1 }

</bundles_post_ra>
